<compile_context>
chip_gen: v7x
topology: tpu7x:2x2x1
jax: 0.10.0
libtpu: 0.0.40
codegen_flags: <defaults>
</compile_context>

<pallas_src>
import jax
import jax.numpy as jnp
from jax import lax
from jax.experimental import pallas as pl
from jax.experimental.pallas import tpu as pltpu


# Contract K (dim 1) of x (tm, tk) with K (dim 1) of a (tn, tk) weight tile.
_DIMS = (((1,), (1,)), ((), ()))


# ----------------------------------------------------------------------------
# Helpers shared by the kernels.
# ----------------------------------------------------------------------------
def _binarize_block(w, scalars_ref):
    """Apply where(outlier, w*outlier_scale, sign(w)*binary_scale) to an f32 block."""
    lo = scalars_ref[0]
    hi = scalars_ref[1]
    outlier_scale = scalars_ref[2]
    binary_scale = scalars_ref[3]
    is_outlier = (w < lo) | (w > hi)
    # sign(w) * binary_scale without the per-element multiply; preserves sign(0)==0
    # (torch.sign / STEBinary forward semantics).
    bin_w = jnp.where(w > 0, binary_scale, jnp.where(w < 0, -binary_scale, 0.0))
    return jnp.where(is_outlier, w * outlier_scale, bin_w)


# ----------------------------------------------------------------------------
# Pass 1 (two-pass path): binarize the weight once and write it TRANSPOSED
# as (K, N) bf16 so pass 2 is a canonical matmul (no in-loop XLU transpose).
# The transpose here hides under HBM streaming (pass 1 is memory bound).
# ----------------------------------------------------------------------------
def _binarize_transpose_kernel(scalars_ref, w_ref, wsim_ref):
    w_sim = _binarize_block(w_ref[...], scalars_ref)          # (bn, bk) f32
    wsim_ref[...] = w_sim.T.astype(wsim_ref.dtype)            # (bk, bn) bf16


# ----------------------------------------------------------------------------
# Pass 2 (two-pass path): canonical (tm,tk)x(tk,tn) bf16 matmul, f32 accumulation
# directly into the VMEM-resident output block (same (i,j) index across k).
# ----------------------------------------------------------------------------
def _matmul_kernel_bias(x_ref, w_ref, b_ref, o_ref):
    @pl.when(pl.program_id(2) == 0)
    def _():
        o_ref[...] = jnp.broadcast_to(b_ref[...], o_ref.shape)
    o_ref[...] += jnp.dot(x_ref[...], w_ref[...], preferred_element_type=jnp.float32)


def _matmul_kernel_nobias(x_ref, w_ref, o_ref):
    @pl.when(pl.program_id(2) == 0)
    def _():
        o_ref[...] = jnp.zeros_like(o_ref)
    o_ref[...] += jnp.dot(x_ref[...], w_ref[...], preferred_element_type=jnp.float32)


# ----------------------------------------------------------------------------
# Fused path (M fits a single tile): binarize the f32 weight tile in-kernel
# and feed it straight to the MXU. Weight makes one HBM trip instead of three.
# ----------------------------------------------------------------------------
def _fused_kernel_bias(scalars_ref, x_ref, w_ref, b_ref, o_ref):
    w_sim = _binarize_block(w_ref[...], scalars_ref).astype(jnp.bfloat16)   # (tn, tk)

    @pl.when(pl.program_id(1) == 0)
    def _():
        o_ref[...] = jnp.broadcast_to(b_ref[...], o_ref.shape)

    # Transposed-RHS contraction; any implicit transpose hides under the f32
    # weight DMA which dominates this memory-bound small-M path.
    o_ref[...] += lax.dot_general(x_ref[...], w_sim, dimension_numbers=_DIMS,
                                  preferred_element_type=jnp.float32)


def _fused_kernel_nobias(scalars_ref, x_ref, w_ref, o_ref):
    w_sim = _binarize_block(w_ref[...], scalars_ref).astype(jnp.bfloat16)

    @pl.when(pl.program_id(1) == 0)
    def _():
        o_ref[...] = jnp.zeros_like(o_ref)

    o_ref[...] += lax.dot_general(x_ref[...], w_sim, dimension_numbers=_DIMS,
                                  preferred_element_type=jnp.float32)


# ----------------------------------------------------------------------------
# Host-side glue.
# ----------------------------------------------------------------------------
def _pick_tile(dim, target, align):
    """Largest multiple of `align` that divides `dim` and is <= target, else full dim."""
    if dim <= target:
        return dim
    t = (min(target, dim) // align) * align
    while t >= align:
        if dim % t == 0:
            return t
        t -= align
    return dim


def _weight_stats(weight, outlier_scale):
    """Global thresholds and binary_scale. Two-pass variance (ddof=1) for stability."""
    w = weight.astype(jnp.float32)
    n = w.size
    mean = jnp.sum(w) / n
    var = jnp.sum(jnp.square(w - mean)) / (n - 1)      # unbiased, numerically stable
    std = jnp.sqrt(jnp.maximum(var, 0.0))
    lo = mean - 1.6 * std
    hi = mean + 1.6 * std
    is_out = (w < lo) | (w > hi)
    non_out_abs_sum = jnp.sum(jnp.where(is_out, 0.0, jnp.abs(w)))
    non_out_cnt = n - jnp.sum(is_out.astype(jnp.int32))
    binary_scale = non_out_abs_sum / jnp.maximum(non_out_cnt, 1).astype(jnp.float32)
    return jnp.stack([lo, hi, jnp.float32(outlier_scale), binary_scale]).astype(jnp.float32)


def _vmem_limit_bytes():
    """Generation-aware VMEM limit (~65% of per-core capacity, conservative fallback)."""
    cap = 64 * 1024 * 1024          # v7x per-TC physical VMEM (smallest generation)
    try:
        info = pltpu.get_tpu_info()
        cap = int(getattr(info, "vmem_capacity_bytes", cap))
    except Exception:
        pass
    return max(32 * 1024 * 1024, min(int(cap * 0.65), 100 * 1024 * 1024))


def binary_xnor_except_outliers_linear(x, weight, bias=None, outlier_scale=1.0,
                                       *, tm=None, tn=None, tk=None):
    """JAX/Pallas equivalent of BinaryXnorExceptOutliersLinear.forward.

    x:      (..., K) float32   (batch..., in_features)
    weight: (N, K)   float32   (out_features, in_features)
    bias:   (N,)     float32 or None
    """
    orig_shape = x.shape
    K = orig_shape[-1]
    x2 = x.reshape(-1, K)
    M = x2.shape[0]
    N, K2 = weight.shape
    assert K == K2

    scalars = _weight_stats(weight, outlier_scale)
    w_f32 = weight.astype(jnp.float32)
    x_bf16 = x2.astype(jnp.bfloat16)
    has_bias = bias is not None
    bias2d = bias.reshape(1, N).astype(jnp.float32) if has_bias else None
    vmem = _vmem_limit_bytes()

    # Large MXU-sized tiles; tn/tk 128-lane aligned so output stores stay lane-dense.
    if tm is None:
        tm = _pick_tile(M, 512, 8)
    if tn is None:
        tn = _pick_tile(N, 512, 128)
    if tk is None:
        tk = _pick_tile(K, 2048, 128)
    assert M % tm == 0 and N % tn == 0 and K % tk == 0

    fuse = (tm == M)   # whole batch fits one M tile -> fuse binarize into the matmul

    if fuse:
        # v7x: keep >= 2 parallel output blocks so both TensorCores get work.
        if N // tn < 2 and tn % 256 == 0:
            tn //= 2
        grid = (N // tn, K // tk)
        in_specs = [
            pl.BlockSpec(memory_space=pltpu.MemorySpace.SMEM),        # scalars
            pl.BlockSpec((M, tk), lambda j, k: (0, k)),               # x  (bf16)
            pl.BlockSpec((tn, tk), lambda j, k: (j, k)),              # weight (f32)
        ]
        args = [scalars, x_bf16, w_f32]
        if has_bias:
            in_specs.append(pl.BlockSpec((1, tn), lambda j, k: (0, j)))
            args.append(bias2d)
            kernel = _fused_kernel_bias
        else:
            kernel = _fused_kernel_nobias
        out = pl.pallas_call(
            kernel,
            out_shape=jax.ShapeDtypeStruct((M, N), jnp.float32),
            grid_spec=pltpu.PrefetchScalarGridSpec(
                num_scalar_prefetch=0,
                grid=grid,
                in_specs=in_specs,
                out_specs=pl.BlockSpec((M, tn), lambda j, k: (0, j)),
            ),
            compiler_params=pltpu.CompilerParams(
                dimension_semantics=("parallel", "arbitrary"),
                vmem_limit_bytes=vmem),
        )(*args)
        return out.reshape(orig_shape[:-1] + (N,))

    # ---- two-pass path --------------------------------------------------------
    # v7x: keep >= 2 parallel output blocks so both TensorCores get work.
    if (M // tm) * (N // tn) < 2:
        if tn % 256 == 0:
            tn //= 2
        elif tm % 16 == 0:
            tm //= 2

    # Pass 1: binarize + transpose weight once -> (K, N) bf16.
    bn = _pick_tile(N, 512, 128)
    bk = _pick_tile(K, 2048, 128)
    w_sim_t = pl.pallas_call(
        _binarize_transpose_kernel,
        out_shape=jax.ShapeDtypeStruct((K, N), jnp.bfloat16),
        grid_spec=pltpu.PrefetchScalarGridSpec(
            num_scalar_prefetch=0,
            grid=(N // bn, K // bk),
            in_specs=[
                pl.BlockSpec(memory_space=pltpu.MemorySpace.SMEM),    # scalars
                pl.BlockSpec((bn, bk), lambda i, j: (i, j)),          # weight (f32)
            ],
            out_specs=pl.BlockSpec((bk, bn), lambda i, j: (j, i)),    # w_sim (K,N) bf16
        ),
        compiler_params=pltpu.CompilerParams(
            dimension_semantics=("parallel", "parallel"),
            vmem_limit_bytes=vmem),
    )(scalars, w_f32)

    # Pass 2: canonical bf16 MXU matmul, f32 accumulation in the resident output block.
    grid = (M // tm, N // tn, K // tk)
    in_specs = [
        pl.BlockSpec((tm, tk), lambda i, j, k: (i, k)),               # x
        pl.BlockSpec((tk, tn), lambda i, j, k: (k, j)),               # w_sim (K,N)
    ]
    args = [x_bf16, w_sim_t]
    if has_bias:
        in_specs.append(pl.BlockSpec((1, tn), lambda i, j, k: (0, j)))
        args.append(bias2d)
        kernel = _matmul_kernel_bias
    else:
        kernel = _matmul_kernel_nobias
    out = pl.pallas_call(
        kernel,
        out_shape=jax.ShapeDtypeStruct((M, N), jnp.float32),
        grid_spec=pltpu.PrefetchScalarGridSpec(
            num_scalar_prefetch=0,
            grid=grid,
            in_specs=in_specs,
            out_specs=pl.BlockSpec((tm, tn), lambda i, j, k: (i, j)),
        ),
        compiler_params=pltpu.CompilerParams(
            dimension_semantics=("parallel", "parallel", "arbitrary"),
            vmem_limit_bytes=vmem),
    )(*args)
    return out.reshape(orig_shape[:-1] + (N,))


# ----------------------------------------------------------------------------
# Reference (pure JAX, f32) — uses the same statistics so threshold
# classification is identical; kernel differs only by bf16 rounding of operands.
# ----------------------------------------------------------------------------
def _reference(x, weight, bias, outlier_scale=1.0):
    scalars = _weight_stats(weight, outlier_scale)
    lo, hi, osc, bsc = scalars[0], scalars[1], scalars[2], scalars[3]
    mask = (weight < lo) | (weight > hi)
    w_sim = jnp.where(mask, weight * osc, jnp.sign(weight) * bsc)
    b = bias if bias is not None else 0.0
    return x @ w_sim.T + b


if __name__ == "__main__":
    key = jax.random.PRNGKey(0)
    k1, k2, k3 = jax.random.split(key, 3)

    M, K, N = 128, 512, 256  # batch, in_features, out_features
    x = jax.random.normal(k1, (M, K), dtype=jnp.float32)
    weight = jax.random.normal(k2, (N, K), dtype=jnp.float32) * 0.05
    bias = jax.random.normal(k3, (N,), dtype=jnp.float32) * 0.1

    ref_b = _reference(x, weight, bias, outlier_scale=1.0)
    ref_nb = _reference(x, weight, None, outlier_scale=1.0)

    # Path A: fused binarize-into-matmul (M fits one tile), single-K.
    out_fused = jax.block_until_ready(
        binary_xnor_except_outliers_linear(x, weight, bias, outlier_scale=1.0))
    # Path B: two-pass (pass-1 binarize+transpose, pass-2 matmul), multi-K accumulation.
    out_two = jax.block_until_ready(
        binary_xnor_except_outliers_linear(x, weight, bias, outlier_scale=1.0,
                                           tm=64, tk=128))
    # Path C: fused no-bias variant with multi-K accumulation.
    out_nb = jax.block_until_ready(
        binary_xnor_except_outliers_linear(x, weight, None, outlier_scale=1.0, tk=128))

    assert out_fused.shape == (M, N) and out_two.shape == (M, N) and out_nb.shape == (M, N)
    # bf16 operands with f32 accumulation -> relaxed tolerance vs f32 reference.
    assert jnp.allclose(out_fused, ref_b, atol=5e-2, rtol=5e-2), "fused path mismatch"
    assert jnp.allclose(out_two, ref_b, atol=5e-2, rtol=5e-2), "two-pass path mismatch"
    assert jnp.allclose(out_nb, ref_nb, atol=5e-2, rtol=5e-2), "no-bias path mismatch"

    print("KERNEL_OK")
</pallas_src>

<mosaic_0001>
module attributes {stable_mosaic.version = 11 : i64} {
  func.func @_fused_kernel_bias(%arg0: i32, %arg1: i32, %arg2: memref<4xf32, #tpu.memory_space<smem>>, %arg3: memref<128x512xbf16, #tpu.memory_space<vmem>>, %arg4: memref<128x512xf32, #tpu.memory_space<vmem>>, %arg5: memref<1x128xf32, #tpu.memory_space<vmem>>, %arg6: memref<128x128xf32, #tpu.memory_space<vmem>>) attributes {dimension_semantics = [#tpu.dimension_semantics<parallel>, #tpu.dimension_semantics<arbitrary>], iteration_bounds = array<i64: 2, 1>, scalar_prefetch = 0 : i64, scratch_operands = 0 : i64, tpu.core_type = #tpu.core_type<tc>, window_params = [{transform_indices = @transform_0, window_bounds = array<i64: 4>}, {transform_indices = @transform_1, window_bounds = array<i64: 128, 512>}, {transform_indices = @transform_2, window_bounds = array<i64: 128, 512>}, {transform_indices = @transform_3, window_bounds = array<i64: 1, 128>}, {transform_indices = @transform_4, window_bounds = array<i64: 128, 128>}]} {
    %c0 = arith.constant 0 : index
    %c0_0 = arith.constant 0 : index
    %0 = vector.load %arg4[%c0, %c0_0] : memref<128x512xf32, #tpu.memory_space<vmem>>, vector<128x512xf32>
    %c0_1 = arith.constant 0 : index
    %1 = memref.load %arg2[%c0_1] : memref<4xf32, #tpu.memory_space<smem>>
    %c1 = arith.constant 1 : index
    %2 = memref.load %arg2[%c1] : memref<4xf32, #tpu.memory_space<smem>>
    %c2 = arith.constant 2 : index
    %3 = memref.load %arg2[%c2] : memref<4xf32, #tpu.memory_space<smem>>
    %c3 = arith.constant 3 : index
    %4 = memref.load %arg2[%c3] : memref<4xf32, #tpu.memory_space<smem>>
    %5 = vector.broadcast %1 : f32 to vector<128x512xf32>
    %6 = arith.cmpf olt, %0, %5 : vector<128x512xf32>
    %7 = vector.broadcast %2 : f32 to vector<128x512xf32>
    %8 = arith.cmpf ogt, %0, %7 : vector<128x512xf32>
    %9 = arith.ori %6, %8 : vector<128x512xi1>
    %cst = arith.constant 0.000000e+00 : f32
    %10 = vector.broadcast %cst : f32 to vector<128x512xf32>
    %11 = arith.cmpf ogt, %0, %10 : vector<128x512xf32>
    %cst_2 = arith.constant 0.000000e+00 : f32
    %12 = vector.broadcast %cst_2 : f32 to vector<128x512xf32>
    %13 = arith.cmpf olt, %0, %12 : vector<128x512xf32>
    %cst_3 = arith.constant 0.000000e+00 : f32
    %14 = arith.subf %cst_3, %4 : f32
    %cst_4 = arith.constant 0.000000e+00 : f32
    %15 = vector.broadcast %14 : f32 to vector<128x512xf32>
    %16 = vector.broadcast %cst_4 : f32 to vector<128x512xf32>
    %17 = arith.select %13, %15, %16 : vector<128x512xi1>, vector<128x512xf32>
    %18 = vector.broadcast %4 : f32 to vector<128x512xf32>
    %19 = arith.select %11, %18, %17 : vector<128x512xi1>, vector<128x512xf32>
    %20 = vector.broadcast %3 : f32 to vector<128x512xf32>
    %21 = arith.mulf %0, %20 : vector<128x512xf32>
    %22 = arith.select %9, %21, %19 : vector<128x512xi1>, vector<128x512xf32>
    %23 = arith.truncf %22 : vector<128x512xf32> to vector<128x512xbf16>
    %c0_i32 = arith.constant 0 : i32
    %24 = arith.cmpi eq, %arg1, %c0_i32 : i32
    %25 = arith.extui %24 : i1 to i32
    %c0_i32_5 = arith.constant 0 : i32
    %26 = arith.cmpi ne, %25, %c0_i32_5 : i32
    scf.if %26 {
      %c0_13 = arith.constant 0 : index
      %c0_14 = arith.constant 0 : index
      %32 = vector.load %arg5[%c0_13, %c0_14] : memref<1x128xf32, #tpu.memory_space<vmem>>, vector<1x128xf32>
      %33 = vector.shape_cast %32 : vector<1x128xf32> to vector<1x128xf32>
      %34 = vector.broadcast %33 : vector<1x128xf32> to vector<128x128xf32>
      %c0_15 = arith.constant 0 : index
      %c0_16 = arith.constant 0 : index
      %35 = vector.load %arg6[%c0_15, %c0_16] : memref<128x128xf32, #tpu.memory_space<vmem>>, vector<128x128xf32>
      tpu.vector_store %arg6[%c0_15, %c0_16], %34 {strides = array<i32>} : memref<128x128xf32, #tpu.memory_space<vmem>>, vector<128x128xf32>,
    } else {
    }
    %c0_6 = arith.constant 0 : index
    %c0_7 = arith.constant 0 : index
    %27 = vector.load %arg6[%c0_6, %c0_7] : memref<128x128xf32, #tpu.memory_space<vmem>>, vector<128x128xf32>
    %c0_8 = arith.constant 0 : index
    %c0_9 = arith.constant 0 : index
    %28 = vector.load %arg3[%c0_8, %c0_9] : memref<128x512xbf16, #tpu.memory_space<vmem>>, vector<128x512xbf16>
    %cst_10 = arith.constant dense<0.000000e+00> : vector<128x128xf32>
    %29 = tpu.matmul %28, %23, %cst_10 {dimension_numbers = #tpu.dot_dimension_numbers<[1], [1], [0], [0], [0, 0, 1, 0], [], []>} : vector<128x512xbf16>, vector<128x512xbf16>, vector<128x128xf32> -> vector<128x128xf32>
    %30 = arith.addf %27, %29 : vector<128x128xf32>
    %c0_11 = arith.constant 0 : index
    %c0_12 = arith.constant 0 : index
    %31 = vector.load %arg6[%c0_11, %c0_12] : memref<128x128xf32, #tpu.memory_space<vmem>>, vector<128x128xf32>
    tpu.vector_store %arg6[%c0_11, %c0_12], %30 {strides = array<i32>} : memref<128x128xf32, #tpu.memory_space<vmem>>, vector<128x128xf32>,
    return
  }
  func.func @transform_0(%arg0: i32, %arg1: i32) -> i32 {
    %c0_i32 = arith.constant 0 : i32
    %c0_i32_0 = arith.constant 0 : i32
    return %c0_i32 : i32
  }
  func.func @transform_1(%arg0: i32, %arg1: i32) -> (i32, i32) {
    %c0_i32 = arith.constant 0 : i32
    %c0_i32_0 = arith.constant 0 : i32
    return %c0_i32, %arg1 : i32, i32
  }
  func.func @transform_2(%arg0: i32, %arg1: i32) -> (i32, i32) {
    %c0_i32 = arith.constant 0 : i32
    return %arg0, %arg1 : i32, i32
  }
  func.func @transform_3(%arg0: i32, %arg1: i32) -> (i32, i32) {
    %c0_i32 = arith.constant 0 : i32
    %c0_i32_0 = arith.constant 0 : i32
    return %c0_i32, %arg0 : i32, i32
  }
  func.func @transform_4(%arg0: i32, %arg1: i32) -> (i32, i32) {
    %c0_i32 = arith.constant 0 : i32
    %c0_i32_0 = arith.constant 0 : i32
    return %c0_i32, %arg0 : i32, i32
  }
}

</mosaic_0001>

<bundles_post_ra>
// kernel: tpu_custom_call.1
= control target key start
LH: loop header
LB: loop body
LE: loop exit
PB: predicated region body
PF: predicated region fallthrough
CT: control target
= control target key end

     0   :  { %9 = vsyncpa [#allocation5], 0  ;;  %s3090_s0 = inlined_call_operand.hbm [shape: f32[4], index: 0, kind: input, shape index: {}]   ;;  %s3091_s1 = inlined_call_operand.hbm [shape: bf16[128,512], index: 1, kind: input, shape index: {}]   ;;  %s3092_s2 = inlined_call_operand.hbm [shape: f32[256,512], index: 2, kind: input, shape index: {}]   ;;  %s3093_s3 = inlined_call_operand.vmem [shape: f32[1,256], index: 3, kind: input, shape index: {}]   ;;  %s3094_s4 = inlined_call_operand.hbm [shape: f32[128,256], index: 4, kind: output, shape index: {}]  }
   0x1   :  { %10 = vsyncpa [#allocation3], 0 }
   0x2   :  { %11 = vsyncpa [#allocation8], 0 }
   0x3   :  { %13 = vsyncpa [#allocation8 + $0x1], 0 }
   0x4   :  { %14 = vsyncpa [#allocation4], 0 }
   0x5   :  { %16 = vsyncpa [#allocation4 + $0x1], 0  ;;  %s1955_s15 = smov 0   ;;  %s1957_s16 = smov 0  }
   0x6   :  { %s1959_s17 = smov 0   ;;  %s1961_s18 = smov 0  }
   0x7   :  { %s1963_s19 = smov 0   ;;  %s1965_s20 = smov 0  }
   0x8 LB: > { %s1561_s21 = sadd.s32 4294967295, %s1917_s20   ;;  %s1562_s22 = sadd.s32 4294967294, %s1917_s20   ;;  %s1917_s20 = sphi %s1965_s20, %s22_s20   ;;  %s1913_s19 = sphi %s1963_s19, %s3248_s19   ;;  %s1909_s18 = sphi %s1961_s18, %s3247_s18   ;;  %s1905_s17 = sphi %s1959_s17, %s3246_s17   ;;  %s1901_s16 = sphi %s1957_s16, %s3245_s16   ;;  %s1897_s15 = sphi %s1955_s15, %s3244_s15  }
   0x9   : > { %s90_s23 = sadd.s32 1, %s1905_s17  ;;  %p97_p0 = scmp.ne.s32.totalorder %s1905_s17, %s1901_s16 }
   0xa   : > { %p98_p1 = scmp.eq.s32.totalorder %s1917_s20, 0  ;;  %p103_p2 = scmp.ne.s32.totalorder %s1901_s16, %s1897_s15 }
   0xb   : > { %p1993_p3 = scmp.eq.s32.totalorder %s1561_s21, 0  ;;  %p153_p4 = scmp.eq.s32.totalorder %s1561_s21, 1 }
   0xc   : > { %p99_p5 = por %p98_p1, %p97_p0  ;;  %p159_p6 = scmp.eq.s32.totalorder %s1562_s22, 1 }
   0xd   : > { %s3099_s24 = scalar_select %p1993_p3, 1, 0 }
   0xe   : > { %p1999_p7 = por %p1993_p3, %p103_p2  ;;  %p2003_p8 = por %p153_p4, %p97_p0 }
   0xf   : > { %p2007_p9 = por %p159_p6, %p103_p2  ;;  %p1563_p10 = scmp.ge.s32.totalorder %s1917_s20, 1 }
  0x10   : > { %s3100_s25 = scalar_select %p1999_p7, 1, 0 }
  0x11   : > { %s3101_s26 = scalar_select %p2003_p8, 1, 0 }
  0x12   : > { %s3102_s27 = scalar_select %p2007_p9, 1, 0 }
  0x13   : > { %p166_p11 = scmp.lt.s32.totalorder %s1917_s20, 3  ;;  %p1647_p1 = scmp.lt.s32.totalorder %s1917_s20, 2 }
  0x14   : > { %s1919_s30 = smov [#allocation6]   ;;  %p3105_p0 = scmp.ne.s32.totalorder %s3099_s24, 0 }
  0x15   : > { %p2014_p13 = pnand %p1563_p10, %p166_p11  ;;  %p2021_p7 = pnand %p1647_p1, %p99_p5 }
  0x16   : > { %s190_s5 = sshll.u32 %s1919_s30, 4  ;;  %s1756_s9 = scalar_lea.hbm %s3090_s0, 16  ;;  %s2031_s5 = int_to_ptr.vmem [resolvable:$true] %s190_s5 }
  0x17   : > { %p1630_p3 = pneg %p2014_p13  ;;  %p1757_p4 = scmp.ne.s32.totalorder %s3090_s0, %s1756_s9 }
  0x18   : > { %p1763_p10 = scmp.lt.u32.totalorder %s1756_s9, %s3090_s0 }
  0x19   : > { %p2027_p2 = pnand %p1630_p3, %p3105_p0 }
  0x1b   : > { %p1758_p5 = pneg %p2027_p2 }
  0x1d   : > { %p1759_p3 = pnand %p1758_p5, %p1757_p4 }
  0x1f   : > { %p1760_p6 = pneg %p1759_p3 }
  0x21   : > { %p1765_p11 = pnand %p1763_p10, %p1760_p6 }
  0x23   : > { %1768 = shalt.err (!%p1765_p11)
}
  0x24   : > { %s1920_s14 = smov [#allocation2]   ;;  %s1769_s8 = scalar_lea.hbm %s3091_s1, 4096 }
  0x25   : > { %1633 = dma.hbm_to_smem (!%p2027_p2), %s3090_s0, 16, %s1920_s14, [#allocation5]  }
  0x26   : > { %p1770_p1 = scmp.ne.s32.totalorder %s3091_s1, %s1769_s8  ;;  %p1776_p3 = scmp.lt.u32.totalorder %s1769_s8, %s3091_s1 }
  0x28   : > { %p1772_p0 = pnand %p1770_p1, %p1758_p5 }
  0x2a   : > { %p1773_p4 = pneg %p1772_p0 }
  0x2c   : > { %p1778_p6 = pnand %p1776_p3, %p1773_p4 }
  0x2e   : > { %1781 = shalt.err (!%p1778_p6)
}
  0x2f   : > { %s1782_s13 = scalar_lea.vmem %s2031_s5, 4096  ;;  %p1790_p9 = scmp.lt.s32.totalorder %s2031_s5, %s2031_s5 }
  0x30   : > { %p1783_p10 = scmp.ne.s32.totalorder %s2031_s5, %s1782_s13  ;;  %p1791_p1 = scmp.lt.s32.totalorder %s1782_s13, %s1782_s13 }
  0x32   : > { %p1785_p11 = pnand %p1783_p10, %p1758_p5  ;;  %p1792_p0 = por %p1791_p1, %p1790_p9 }
  0x34   : > { %p1786_p12 = pneg %p1785_p11 }
  0x36   : > { %p1793_p8 = pnand %p1792_p0, %p1786_p12 }
  0x38   : > { %1796 = shalt.err (!%p1793_p8)
}
  0x39   : > { %s1921_s14 = smov 256   ;;  %s1922_s21 = smov 16  }
  0x3a   : > { %1636 = dma.hbm_to_vmem [thread:$0]  (!%p2027_p2), %s3091_s1, 4096, %s2031_s5, [#allocation3], %s1921_s14, %s1921_s14, %s1922_s21  }
  0x3b   : > { %s34_s7 = sadd.s32 1, %s1913_s19  ;;  %s204_s8 = sand.u32 1, %s1905_s17  }
  0x3c   : > { %p36_p8 = scmp.ge.s32.totalorder %s34_s7, 2  ;;  %s1567_s10 = sshll.u32 %s204_s8, 9 }
  0x3d   : > { %s1617_s11 = sshll.u32 %s1913_s19, 13  ;;  %s208_s5 = scalar_lea.vmem [#allocation7], %s1567_s10 }
  0x3e   : > { %s3250_s7 = smov (%p36_p8, %s34_s7), 0  ;;  %s2085_s13 = scalar_lea.hbm %s3092_s2, %s1617_s11 }
  0x3f   : > { %s85_s6 = ssub.s32 %s1913_s19, %s3250_s7  ;;  %s218_s14 = sshll.u32 %s208_s5, 4  ;;  %s2089_s14 = int_to_ptr.vmem [resolvable:$true] %s218_s14 }
  0x40   : > { %p88_p9 = scmp.eq.s32.totalorder %s85_s6, 0  ;;  %s2096_s22 = scalar_lea.sflag [#allocation8], %s204_s8 }
  0x41   : > { %s1797_s30 = scalar_lea.hbm %s2085_s13, 8192  ;;  %p1799_p2 = pneg %p2021_p7 }
  0x42   : > { %s2094_s21 = scalar_select %p88_p9, %s1905_s17, %s90_s23  }
  0x43   : > { %p1798_p12 = scmp.ne.s32.totalorder %s2085_s13, %s1797_s30  ;;  %s1802_s10 = scalar_lea.hbm %s3092_s2, 16384 }
  0x44   : > { %p1803_p3 = scmp.lt.u32.totalorder %s2085_s13, %s3092_s2  ;;  %p1804_p6 = scmp.lt.u32.totalorder %s1802_s10, %s1797_s30 }
  0x45   : > { %p1800_p5 = pnand %p1799_p2, %p1798_p12  ;;  %p1806_p11 = scmp.lt.u32.totalorder %s1797_s30, %s2085_s13 }
  0x46   : > { %p1805_p10 = por %p1804_p6, %p1803_p3 }
  0x47   : > { %p1801_p4 = pneg %p1800_p5 }
  0x48   : > { %p1807_p1 = por %p1806_p11, %p1805_p10 }
  0x4a   : > { %p1808_p0 = pnand %p1807_p1, %p1801_p4 }
  0x4c   : > { %1811 = shalt.err (!%p1808_p0)
}
  0x4d   : > { %s1812_s23 = scalar_lea.vmem %s2089_s14, 8192  ;;  %s1923_s8 = smov [#allocation7]  }
  0x4e   : > { %p1813_p8 = scmp.ne.s32.totalorder %s2089_s14, %s1812_s23  ;;  %s1817_s5 = sshll.u32 %s1923_s8, 4  ;;  %s1818_s5 = int_to_ptr.vmem [resolvable:$false] %s1817_s5 }
  0x4f   : > { %s1819_s11 = scalar_lea.vmem %s1818_s5, 16384  ;;  %p1820_p5 = scmp.lt.s32.totalorder %s2089_s14, %s1818_s5 }
  0x50   : > { %p1815_p9 = pnand %p1813_p8, %p1799_p2  ;;  %p1821_p3 = scmp.lt.s32.totalorder %s1819_s11, %s1812_s23 }
  0x52   : > { %p1816_p12 = pneg %p1815_p9  ;;  %p1822_p6 = por %p1821_p3, %p1820_p5 }
  0x54   : > { %p1823_p10 = pnand %p1822_p6, %p1816_p12 }
  0x56   : > { %1826 = shalt.err (!%p1823_p10)
}
  0x57   : > { %s1924_s30 = smov 512   ;;  %s1925_s9 = smov 32  }
  0x58   : > { %1640 = dma.hbm_to_vmem [thread:$0]  (!%p2021_p7), %s2085_s13, 8192, %s2089_s14, %s2096_s22, %s1924_s30, %s1924_s30, %s1925_s9  }
  0x59   : > { %236 = sbr.rel (%p2014_p13) target bundleno = 547 (0x223), region = 36  ;;  %p3107_p2 = scmp.ne.s32.totalorder (!%p2014_p13), %s3099_s24, 0 }
  0x60   : > { %1880 = dma.done.wait (%p3107_p2), [#allocation5], 16  }
  0x61   : > { %1882 = vsyncadd (%p3107_p2), [#allocation5], 4294967280 }
  0x62   : > { %1884 = dma.done.wait (%p3107_p2), [#allocation3], 4096  }
  0x63   : > { %1886 = vsyncadd (%p3107_p2), [#allocation3], 4294963200  ;;  %s2135_s10 = sand.u32 1, %s1901_s16   ;;  %p3108_p7 = scmp.ne.s32.totalorder %s3100_s25, 0 }
  0x64   : > { %s1574_s28 = sshll.u32 %s2135_s10, 9  ;;  %s247_s29 = scalar_lea.sflag [#allocation8], %s2135_s10 }
  0x65   : > { %s2139_s13 = scalar_lea.vmem [#allocation7], %s1574_s28 }
  0x66   : > { %1888 = dma.done.wait (%p3108_p7), %s247_s29, 8192  }
  0x67   : > { %1890 = vsyncadd (%p3108_p7), %s247_s29, 4294959104 }
  0x68   : > { %255 = sfence }
  0x69   : > { %v287_v0 = vld [vmem:[%s2139_s13 + $0x8] sm:$0xff]  ;;  %s350_s24 = sld [smem:[#allocation2]]  ;;  %s1576_s14 = sld [smem:[#allocation2 + $0x1]]  ;;  %v289_v2 = vld [vmem:[%s2139_s13 + $0x18] sm:$0xff]  ;;  %v2154_v4 = vld [vmem:[%s2139_s13] sm:$0xff] }
  0x6a   : > { %v291_v1 = vld [vmem:[%s2139_s13 + $0x28] sm:$0xff]  ;;  %s2147_s22 = sld [smem:[#allocation2 + $0x2]]  ;;  %s2149_s12 = sld [smem:[#allocation2 + $0x3]]  ;;  %v293_v3 = vld [vmem:[%s2139_s13 + $0x38] sm:$0xff]  ;;  %vm549_vm0 = vcmp.gt.f32.partialorder %v287_v0, 0.0  ;;  %v2157_v5 = vld [vmem:[%s2139_s13 + $0x20] sm:$0xff] }
  0x6b   : > { %vm613_vm2 = vcmp.lt.f32.partialorder %v287_v0, 0.0  ;;  %vm617_vm3 = vcmp.lt.f32.partialorder %v291_v1, 0.0  ;;  %v2160_v6 = vld [vmem:[%s2139_s13 + $0x10] sm:$0xff]  ;;  %vm615_vm6 = vcmp.lt.f32.partialorder %v289_v2, 0.0  ;;  %v2204_v17 = vld [vmem:[%s2139_s13 + $0x48] sm:$0xff]  ;;  %v297_v56 = vld [vmem:[%s2139_s13 + $0x58] sm:$0xff] }
  0x6c   : > { %v2163_v7 = vld [vmem:[%s2139_s13 + $0x30] sm:$0xff]  ;;  %vm614_vm9 = vcmp.lt.f32.partialorder %v2160_v6, 0.0  ;;  %vm550_vm4 = vcmp.gt.f32.partialorder %v2160_v6, 0.0  ;;  %v2207_v18 = vld [vmem:[%s2139_s13 + $0x68] sm:$0xff]  ;;  %v301_v59 = vld [vmem:[%s2139_s13 + $0x78] sm:$0xff]  ;;  %p282_p13 = scmp.lt.s32.totalorder %s1909_s18, 1 }
  0x6d   : > { %vm618_vm8 = vcmp.lt.f32.partialorder %v2163_v7, 0.0  ;;  %vm554_vm7 = vcmp.gt.f32.partialorder %v2163_v7, 0.0  ;;  %v298_v10 = vld [vmem:[%s2139_s13 + $0x60] sm:$0xff]  ;;  %v300_v24 = vld [vmem:[%s2139_s13 + $0x70] sm:$0xff]  ;;  %s1575_s11 = sshll.u32 %s2135_s10, 7  ;;  %s1613_s9 = sshll.u32 %s1909_s18, 7 }
  0x6e   : > { %s283_s6 = scalar_select %p282_p13, %s1909_s18, 1 }
  0x6f   : > { %v2167_v8 = vstv %s350_s24  ;;  %v2169_v9 = vstv %s1576_s14  ;;  %s3001_s30 = scalar_lea.vmem [#allocation9], %s1575_s11  ;;  %s3036_s24 = scalar_lea.hbm %s3094_s4, %s1613_s9 }
  0x70   : > { %vm356_vm12 = vcmp.lt.f32.partialorder %v287_v0, %v2167_v8  ;;  %vm360_vm13 = vcmp.lt.f32.partialorder %v291_v1, %v2167_v8  ;;  %vm421_vm14 = vcmp.gt.f32.partialorder %v287_v0, %v2169_v9  ;;  %vm425_vm15 = vcmp.gt.f32.partialorder %v291_v1, %v2169_v9  ;;  %s676_s25 = ssub.f32 0.0, %s2149_s12  ;;  %s284_s5 = scalar_lea.vmem %s3093_s3, %s283_s6 }
  0x71   : > { %vm2180_vm5 = vmor %vm356_vm12, %vm421_vm14  ;;  %v2185_v11 = vstv %s2149_s12  ;;  %v2188_v12 = vstv %s2147_s22  ;;  %vm358_vm11 = vcmp.lt.f32.partialorder %v289_v2, %v2167_v8  ;;  %vm362_vm10 = vcmp.lt.f32.partialorder %v293_v3, %v2167_v8  ;;  %s1442_s28 = sshll.u32 %s3001_s30, 4  ;;  %s1430_s18 = scalar_lea.sflag [#allocation4], %s2135_s10  ;;  %s3038_s28 = int_to_ptr.vmem [resolvable:$true] %s1442_s28 }
  0x72   : > { %vm2194_vm1 = vmor %vm360_vm13, %vm425_vm15  ;;  %v2198_v14 = vstv %s676_s25  ;;  %v809_v15 = vmul.f32 %v2188_v12, %v287_v0  ;;  %v813_v16 = vmul.f32 %v2188_v12, %v291_v1  ;;  %vm423_vm12 = vcmp.gt.f32.partialorder %v289_v2, %v2169_v9  ;;  %s1827_s14 = scalar_lea.vmem %s3038_s28, 2048  ;;  %p3241_p11 = scmp.ne.s32.totalorder %s3101_s26, 0 }
  0x73   : > { %v679_v19 = vsel %vm613_vm2, %v2198_v14, 0.0  ;;  %v683_v20 = vsel %vm617_vm3, %v2198_v14, 0.0  ;;  %vm427_vm13 = vcmp.gt.f32.partialorder %v293_v3, %v2169_v9  ;;  %v681_v21 = vsel %vm615_vm6, %v2198_v14, 0.0  ;;  %vm2222_vm15 = vmor %vm358_vm11, %vm423_vm12  ;;  %p1828_p4 = scmp.ne.s32.totalorder %s3038_s28, %s1827_s14  ;;  %s1926_s22 = smov [#allocation9]  }
  0x74   : > { %v744_v22 = vsel %vm549_vm0, %v2185_v11, %v679_v19  ;;  %vm3113_vm14 = vcmp.gt.f32.partialorder %v291_v1, 0.0  ;;  %vm3116_vm2 = vcmp.lt.f32.partialorder %v293_v3, 0.0  ;;  %vm3117_vm3 = vcmp.gt.f32.partialorder %v289_v2, 0.0  ;;  %vm2236_vm0 = vmor %vm362_vm10, %vm427_vm13  ;;  %s1831_s12 = sshll.u32 %s1926_s22, 4  ;;  %s1832_s12 = int_to_ptr.vmem [resolvable:$false] %s1831_s12 }
  0x75   : > { %v748_v23 = vsel %vm3113_vm14, %v2185_v11, %v683_v20  ;;  %v685_v25 = vsel %vm3116_vm2, %v2198_v14, 0.0  ;;  %v746_v26 = vsel %vm3117_vm3, %v2185_v11, %v681_v21  ;;  %v873_v27 = vsel %vm2180_vm5, %v809_v15, %v744_v22  ;;  %v296_v21 = vld [vmem:[%s2139_s13 + $0x50] sm:$0xff]  ;;  %p1829_p1 = pnand %p1828_p4, %p3241_p11  ;;  %s1833_s25 = scalar_lea.vmem %s1832_s12, 4096 }
  0x76   : > { %v877_v28 = vsel %vm2194_vm1, %v813_v16, %v748_v23  ;;  %vm3120_vm6 = vcmp.gt.f32.partialorder %v293_v3, 0.0  ;;  %v811_v31 = vmul.f32 %v2188_v12, %v289_v2  ;;  %vm557_vm11 = vcmp.gt.f32.partialorder %v2204_v17, 0.0  ;;  %p1834_p8 = scmp.lt.s32.totalorder %s3038_s28, %s1832_s12  ;;  %p1835_p9 = scmp.lt.s32.totalorder %s1833_s25, %s1827_s14 }
  0x77   : > { %v750_v30 = vsel %vm3120_vm6, %v2185_v11, %v685_v25  ;;  %vm561_vm12 = vcmp.gt.f32.partialorder %v2207_v18, 0.0  ;;  %v937_v32 = vpack.c.bf16 %v877_v28, %v873_v27  ;;  %v815_v33 = vmul.f32 %v2188_v12, %v293_v3  ;;  %v1710_v25 = vld [vmem:[#allocation6 + $0x4] ss:$16 sps:$4 sm:$0xff]   ;;  %p1830_p0 = pneg %p1829_p1 }
  0x78   : > { %vm355_vm1 = vcmp.lt.f32.partialorder %v2154_v4, %v2167_v8  ;;  %vm359_vm5 = vcmp.lt.f32.partialorder %v2157_v5, %v2167_v8  ;;  %v875_v34 = vsel %vm2222_vm15, %v811_v31, %v746_v26  ;;  %vm420_vm10 = vcmp.gt.f32.partialorder %v2154_v4, %v2169_v9  ;;  %1235 = vmatprep.mubr.bf16.mxu0 %v1710_v25  ;;  %v1713_v31 = vld [vmem:[#allocation6 + $0xc] ss:$16 sps:$4 sm:$0xff]   ;;  %p1836_p12 = por %p1835_p9, %p1834_p8 }
  0x79   : > { %vm424_vm13 = vcmp.gt.f32.partialorder %v2157_v5, %v2169_v9  ;;  %vm3121_vm14 = vcmp.lt.f32.partialorder %v2154_v4, 0.0  ;;  %1203 = vmatprep.subr.bf16.mxu0 %v937_v32  ;;  %v879_v36 = vsel %vm2236_vm0, %v815_v33, %v750_v30  ;;  %vm2261_vm2 = vmor %vm355_vm1, %vm420_vm10  ;;  %vm3124_vm15 = vcmp.lt.f32.partialorder %v2157_v5, 0.0  ;;  %1332 = vmatprep.mubr.bf16.mxu1 %v1713_v31 }
  0x7a   : > { %v678_v35 = vsel %vm3121_vm14, %v2198_v14, 0.0  ;;  %v682_v38 = vsel %vm3124_vm15, %v2198_v14, 0.0  ;;  %vm3125_vm3 = vcmp.gt.f32.partialorder %v2154_v4, 0.0  ;;  %v808_v40 = vmul.f32 %v2188_v12, %v2154_v4  ;;  %vm488_vm6 = vmor %vm359_vm5, %vm424_vm13  ;;  %p1837_p5 = pnand %p1836_p12, %p1830_p0 }
  0x7b   : > { %v743_v39 = vsel %vm3125_vm3, %v2185_v11, %v678_v35  ;;  %v939_v41 = vpack.c.bf16 %v879_v36, %v875_v34  ;;  %vm3126_vm0 = vcmp.gt.f32.partialorder %v2157_v5, 0.0  ;;  %v812_v43 = vmul.f32 %v2188_v12, %v2157_v5  ;;  %v294_v5 = vld [vmem:[%s2139_s13 + $0x40] sm:$0xff] }
  0x7c   : > { %v747_v42 = vsel %vm3126_vm0, %v2185_v11, %v682_v38  ;;  %vm357_vm1 = vcmp.lt.f32.partialorder %v2160_v6, %v2167_v8  ;;  %v872_v44 = vsel %vm2261_vm2, %v808_v40, %v743_v39  ;;  %vm361_vm10 = vcmp.lt.f32.partialorder %v2163_v7, %v2167_v8  ;;  %v303_v40 = vld [vmem:[%s2139_s13 + $0x88] sm:$0xff] }
  0x7d   : > { %vm422_vm14 = vcmp.gt.f32.partialorder %v2160_v6, %v2169_v9  ;;  %vm426_vm5 = vcmp.gt.f32.partialorder %v2163_v7, %v2169_v9  ;;  %1300 = vmatprep.subr.bf16.mxu1 %v939_v41  ;;  %v876_v45 = vsel %vm488_vm6, %v812_v43, %v747_v42  ;;  %v680_v47 = vsel %vm614_vm9, %v2198_v14, 0.0  ;;  %v307_v41 = vld [vmem:[%s2139_s13 + $0xa8] sm:$0xff] }
  0x7e   : > { %vm2288_vm13 = vmor %vm357_vm1, %vm422_vm14  ;;  %v684_v48 = vsel %vm618_vm8, %v2198_v14, 0.0  ;;  %v810_v49 = vmul.f32 %v2188_v12, %v2160_v6  ;;  %v936_v50 = vpack.c.bf16 %v876_v45, %v872_v44  ;;  %v745_v52 = vsel %vm550_vm4, %v2185_v11, %v680_v47 }
  0x7f   : > { %vm2300_vm2 = vmor %vm361_vm10, %vm426_vm5  ;;  %v749_v53 = vsel %vm554_vm7, %v2185_v11, %v684_v48  ;;  %v814_v54 = vmul.f32 %v2188_v12, %v2163_v7  ;;  %vm364_vm8 = vcmp.lt.f32.partialorder %v2204_v17, %v2167_v8  ;;  %vm368_vm9 = vcmp.lt.f32.partialorder %v2207_v18, %v2167_v8 }
  0x80   : > { %v874_v55 = vsel %vm2288_vm13, %v810_v49, %v745_v52  ;;  %vm429_vm15 = vcmp.gt.f32.partialorder %v2204_v17, %v2169_v9  ;;  %1204 = vmatpush1.bf16.xpose.msra.mxu0 %v936_v50  ;;  %vm433_vm4 = vcmp.gt.f32.partialorder %v2207_v18, %v2169_v9  ;;  %vm621_vm3 = vcmp.lt.f32.partialorder %v2204_v17, 0.0  ;;  %v305_v50 = vld [vmem:[%s2139_s13 + $0x98] sm:$0xff] }
  0x81   : > { %v878_v57 = vsel %vm2300_vm2, %v814_v54, %v749_v53  ;;  %vm2325_vm7 = vmor %vm364_vm8, %vm429_vm15  ;;  %vm625_vm6 = vcmp.lt.f32.partialorder %v2207_v18, 0.0  ;;  %v687_v62 = vsel %vm621_vm3, %v2198_v14, 0.0  ;;  %v817_v0 = vmul.f32 %v2188_v12, %v2204_v17  ;;  %v309_v53 = vld [vmem:[%s2139_s13 + $0xb8] sm:$0xff] }
  0x82   : > { %v938_v60 = vpack.c.bf16 %v878_v57, %v874_v55  ;;  %vm2332_vm0 = vmor %vm368_vm9, %vm433_vm4  ;;  %v691_v63 = vsel %vm625_vm6, %v2198_v14, 0.0  ;;  %v752_v1 = vsel %vm557_vm11, %v2185_v11, %v687_v62  ;;  %v821_v3 = vmul.f32 %v2188_v12, %v2207_v18 }
  0x83   : > { %v756_v2 = vsel %vm561_vm12, %v2185_v11, %v691_v63  ;;  %vm366_vm1 = vcmp.lt.f32.partialorder %v297_v56, %v2167_v8  ;;  %v881_v4 = vsel %vm2325_vm7, %v817_v0, %v752_v1  ;;  %vm370_vm10 = vcmp.lt.f32.partialorder %v301_v59, %v2167_v8  ;;  %v306_v1 = vld [vmem:[%s2139_s13 + $0xa0] sm:$0xff] }
  0x84   : > { %1301 = vmatpush1.bf16.xpose.msra.mxu1 %v938_v60  ;;  %vm431_vm14 = vcmp.gt.f32.partialorder %v297_v56, %v2169_v9  ;;  %vm435_vm5 = vcmp.gt.f32.partialorder %v301_v59, %v2169_v9  ;;  %v885_v6 = vsel %vm2332_vm0, %v821_v3, %v756_v2  ;;  %vm559_vm12 = vcmp.gt.f32.partialorder %v297_v56, 0.0  ;;  %v302_v60 = vld [vmem:[%s2139_s13 + $0x80] sm:$0xff] }
  0x85   : > { %vm2357_vm11 = vmor %vm366_vm1, %vm431_vm14  ;;  %vm563_vm13 = vcmp.gt.f32.partialorder %v301_v59, 0.0  ;;  %vm623_vm2 = vcmp.lt.f32.partialorder %v297_v56, 0.0  ;;  %v941_v13 = vpack.c.bf16 %v885_v6, %v881_v4  ;;  %vm627_vm9 = vcmp.lt.f32.partialorder %v301_v59, 0.0 }
  0x86   : > { %vm2362_vm8 = vmor %vm370_vm10, %vm435_vm5  ;;  %v689_v16 = vsel %vm623_vm2, %v2198_v14, 0.0  ;;  %v819_v17 = vmul.f32 %v2188_v12, %v297_v56  ;;  %v693_v18 = vsel %vm627_vm9, %v2198_v14, 0.0  ;;  %v823_v20 = vmul.f32 %v2188_v12, %v301_v59 }
  0x87   : > { %v754_v19 = vsel %vm559_vm12, %v2185_v11, %v689_v16  ;;  %vm363_vm15 = vcmp.lt.f32.partialorder %v294_v5, %v2167_v8  ;;  %1205 = vmatprep.subr.bf16.mxu0 %v941_v13  ;;  %v758_v22 = vsel %vm563_vm13, %v2185_v11, %v693_v18  ;;  %vm367_vm4 = vcmp.lt.f32.partialorder %v298_v10, %v2167_v8  ;;  %v304_v18 = vld [vmem:[%s2139_s13 + $0x90] sm:$0xff] }
  0x88   : > { %v883_v23 = vsel %vm2357_vm11, %v819_v17, %v754_v19  ;;  %vm428_vm7 = vcmp.gt.f32.partialorder %v294_v5, %v2169_v9  ;;  %v887_v26 = vsel %vm2362_vm8, %v823_v20, %v758_v22  ;;  %vm432_vm3 = vcmp.gt.f32.partialorder %v298_v10, %v2169_v9 }
  0x89   : > { %vm2382_vm6 = vmor %vm363_vm15, %vm428_vm7  ;;  %vm556_vm0 = vcmp.gt.f32.partialorder %v294_v5, 0.0  ;;  %vm560_vm1 = vcmp.gt.f32.partialorder %v298_v10, 0.0  ;;  %v943_v28 = vpack.c.bf16 %v887_v26, %v883_v23  ;;  %vm620_vm14 = vcmp.lt.f32.partialorder %v294_v5, 0.0 }
  0x8a   : > { %vm2386_vm10 = vmor %vm367_vm4, %vm432_vm3  ;;  %vm624_vm5 = vcmp.lt.f32.partialorder %v298_v10, 0.0  ;;  %v816_v30 = vmul.f32 %v2188_v12, %v294_v5  ;;  %v686_v32 = vsel %vm620_vm14, %v2198_v14, 0.0  ;;  %v820_v34 = vmul.f32 %v2188_v12, %v298_v10 }
  0x8b   : > { %v690_v33 = vsel %vm624_vm5, %v2198_v14, 0.0  ;;  %vm365_vm11 = vcmp.lt.f32.partialorder %v296_v21, %v2167_v8  ;;  %1302 = vmatprep.subr.bf16.mxu1 %v943_v28  ;;  %v751_v35 = vsel %vm556_vm0, %v2185_v11, %v686_v32  ;;  %vm369_vm12 = vcmp.lt.f32.partialorder %v300_v24, %v2167_v8 }
  0x8c   : > { %v755_v36 = vsel %vm560_vm1, %v2185_v11, %v690_v33  ;;  %vm430_vm13 = vcmp.gt.f32.partialorder %v296_v21, %v2169_v9  ;;  %v880_v37 = vsel %vm2382_vm6, %v816_v30, %v751_v35  ;;  %vm434_vm2 = vcmp.gt.f32.partialorder %v300_v24, %v2169_v9  ;;  %v311_v33 = vld [vmem:[%s2139_s13 + $0xc8] sm:$0xff] }
  0x8d   : > { %v884_v38 = vsel %vm2386_vm10, %v820_v34, %v755_v36  ;;  %vm2404_vm8 = vmor %vm365_vm11, %vm430_vm13  ;;  %vm558_vm9 = vcmp.gt.f32.partialorder %v296_v21, 0.0  ;;  %vm562_vm4 = vcmp.gt.f32.partialorder %v300_v24, 0.0  ;;  %vm622_vm7 = vcmp.lt.f32.partialorder %v296_v21, 0.0  ;;  %v315_v34 = vld [vmem:[%s2139_s13 + $0xe8] sm:$0xff] }
  0x8e   : > { %v940_v42 = vpack.c.bf16 %v884_v38, %v880_v37  ;;  %vm2410_vm15 = vmor %vm369_vm12, %vm434_vm2  ;;  %vm626_vm3 = vcmp.lt.f32.partialorder %v300_v24, 0.0  ;;  %v688_v44 = vsel %vm622_vm7, %v2198_v14, 0.0  ;;  %v818_v46 = vmul.f32 %v2188_v12, %v296_v21  ;;  %v308_v21 = vld [vmem:[%s2139_s13 + $0xb0] sm:$0xff] }
  0x8f   : > { %v692_v45 = vsel %vm626_vm3, %v2198_v14, 0.0  ;;  %v822_v47 = vmul.f32 %v2188_v12, %v300_v24  ;;  %v753_v48 = vsel %vm558_vm9, %v2185_v11, %v688_v44  ;;  %vm372_vm6 = vcmp.lt.f32.partialorder %v303_v40, %v2167_v8 }
  0x90   : > { %1206 = vmatpush1.bf16.xpose.msra.mxu0 %v940_v42  ;;  %v757_v49 = vsel %vm562_vm4, %v2185_v11, %v692_v45  ;;  %vm376_vm0 = vcmp.lt.f32.partialorder %v307_v41, %v2167_v8  ;;  %v882_v51 = vsel %vm2404_vm8, %v818_v46, %v753_v48  ;;  %vm437_vm1 = vcmp.gt.f32.partialorder %v303_v40, %v2169_v9  ;;  %v313_v45 = vld [vmem:[%s2139_s13 + $0xd8] sm:$0xff] }
  0x91   : > { %v886_v52 = vsel %vm2410_vm15, %v822_v47, %v757_v49  ;;  %vm441_vm10 = vcmp.gt.f32.partialorder %v307_v41, %v2169_v9  ;;  %vm2430_vm14 = vmor %vm372_vm6, %vm437_vm1  ;;  %vm565_vm5 = vcmp.gt.f32.partialorder %v303_v40, 0.0  ;;  %vm569_vm11 = vcmp.gt.f32.partialorder %v307_v41, 0.0  ;;  %v317_v46 = vld [vmem:[%s2139_s13 + $0xf8] sm:$0xff] }
  0x92   : > { %v942_v54 = vpack.c.bf16 %v886_v52, %v882_v51  ;;  %vm629_vm12 = vcmp.lt.f32.partialorder %v303_v40, 0.0  ;;  %vm2434_vm13 = vmor %vm376_vm0, %vm441_vm10  ;;  %vm633_vm2 = vcmp.lt.f32.partialorder %v307_v41, 0.0  ;;  %v825_v58 = vmul.f32 %v2188_v12, %v303_v40 }
  0x93   : > { %v695_v57 = vsel %vm629_vm12, %v2198_v14, 0.0  ;;  %v829_v59 = vmul.f32 %v2188_v12, %v307_v41  ;;  %v699_v61 = vsel %vm633_vm2, %v2198_v14, 0.0  ;;  %vm374_vm8 = vcmp.lt.f32.partialorder %v305_v50, %v2167_v8 }
  0x94   : > { %1303 = vmatpush1.bf16.xpose.msra.mxu1 %v942_v54  ;;  %v760_v62 = vsel %vm565_vm5, %v2185_v11, %v695_v57  ;;  %vm378_vm9 = vcmp.lt.f32.partialorder %v309_v53, %v2167_v8  ;;  %v764_v63 = vsel %vm569_vm11, %v2185_v11, %v699_v61  ;;  %vm439_vm15 = vcmp.gt.f32.partialorder %v305_v50, %v2169_v9  ;;  %v310_v57 = vld [vmem:[%s2139_s13 + $0xc0] sm:$0xff] }
  0x95   : > { %v889_v0 = vsel %vm2430_vm14, %v825_v58, %v760_v62  ;;  %vm443_vm4 = vcmp.gt.f32.partialorder %v309_v53, %v2169_v9  ;;  %v893_v2 = vsel %vm2434_vm13, %v829_v59, %v764_v63  ;;  %vm2454_vm7 = vmor %vm374_vm8, %vm439_vm15  ;;  %vm567_vm3 = vcmp.gt.f32.partialorder %v305_v50, 0.0 }
  0x96   : > { %vm571_vm6 = vcmp.gt.f32.partialorder %v309_v53, 0.0  ;;  %vm631_vm0 = vcmp.lt.f32.partialorder %v305_v50, 0.0  ;;  %v945_v4 = vpack.c.bf16 %v893_v2, %v889_v0  ;;  %vm2458_vm1 = vmor %vm378_vm9, %vm443_vm4  ;;  %vm635_vm10 = vcmp.lt.f32.partialorder %v309_v53, 0.0 }
  0x97   : > { %v697_v6 = vsel %vm631_vm0, %v2198_v14, 0.0  ;;  %v827_v7 = vmul.f32 %v2188_v12, %v305_v50  ;;  %v701_v10 = vsel %vm635_vm10, %v2198_v14, 0.0  ;;  %v831_v15 = vmul.f32 %v2188_v12, %v309_v53 }
  0x98   : > { %v762_v13 = vsel %vm567_vm3, %v2185_v11, %v697_v6  ;;  %vm371_vm14 = vcmp.lt.f32.partialorder %v302_v60, %v2167_v8  ;;  %1207 = vmatprep.subr.bf16.mxu0 %v945_v4  ;;  %v766_v16 = vsel %vm571_vm6, %v2185_v11, %v701_v10  ;;  %vm375_vm5 = vcmp.lt.f32.partialorder %v306_v1, %v2167_v8  ;;  %v312_v6 = vld [vmem:[%s2139_s13 + $0xd0] sm:$0xff] }
  0x99   : > { %v891_v17 = vsel %vm2454_vm7, %v827_v7, %v762_v13  ;;  %vm436_vm11 = vcmp.gt.f32.partialorder %v302_v60, %v2169_v9  ;;  %v895_v19 = vsel %vm2458_vm1, %v831_v15, %v766_v16  ;;  %vm440_vm12 = vcmp.gt.f32.partialorder %v306_v1, %v2169_v9  ;;  %v316_v13 = vld [vmem:[%s2139_s13 + $0xf0] sm:$0xff] }
  0x9a   : > { %vm2477_vm13 = vmor %vm371_vm14, %vm436_vm11  ;;  %vm564_vm2 = vcmp.gt.f32.partialorder %v302_v60, 0.0  ;;  %vm568_vm8 = vcmp.gt.f32.partialorder %v306_v1, 0.0  ;;  %v947_v22 = vpack.c.bf16 %v895_v19, %v891_v17  ;;  %vm628_vm15 = vcmp.lt.f32.partialorder %v302_v60, 0.0 }
  0x9b   : > { %vm2482_vm9 = vmor %vm375_vm5, %vm440_vm12  ;;  %vm632_vm4 = vcmp.lt.f32.partialorder %v306_v1, 0.0  ;;  %v824_v24 = vmul.f32 %v2188_v12, %v302_v60  ;;  %v694_v25 = vsel %vm628_vm15, %v2198_v14, 0.0  ;;  %v828_v27 = vmul.f32 %v2188_v12, %v306_v1  ;;  %v314_v60 = vld [vmem:[%s2139_s13 + $0xe0] sm:$0xff] }
  0x9c   : > { %v698_v26 = vsel %vm632_vm4, %v2198_v14, 0.0  ;;  %vm373_vm7 = vcmp.lt.f32.partialorder %v304_v18, %v2167_v8  ;;  %1304 = vmatprep.subr.bf16.mxu1 %v947_v22  ;;  %v759_v28 = vsel %vm564_vm2, %v2185_v11, %v694_v25  ;;  %vm377_vm3 = vcmp.lt.f32.partialorder %v308_v21, %v2167_v8 }
  0x9d   : > { %v763_v29 = vsel %vm568_vm8, %v2185_v11, %v698_v26  ;;  %vm438_vm6 = vcmp.gt.f32.partialorder %v304_v18, %v2169_v9  ;;  %v888_v30 = vsel %vm2477_vm13, %v824_v24, %v759_v28  ;;  %vm442_vm0 = vcmp.gt.f32.partialorder %v308_v21, %v2169_v9  ;;  %v319_v26 = vld [vmem:[%s2139_s13 + $0x108] sm:$0xff] }
  0x9e   : > { %v892_v31 = vsel %vm2482_vm9, %v828_v27, %v763_v29  ;;  %vm2500_vm1 = vmor %vm373_vm7, %vm438_vm6  ;;  %vm566_vm10 = vcmp.gt.f32.partialorder %v304_v18, 0.0  ;;  %vm570_vm5 = vcmp.gt.f32.partialorder %v308_v21, 0.0  ;;  %vm630_vm11 = vcmp.lt.f32.partialorder %v304_v18, 0.0  ;;  %v323_v27 = vld [vmem:[%s2139_s13 + $0x128] sm:$0xff] }
  0x9f   : > { %v944_v35 = vpack.c.bf16 %v892_v31, %v888_v30  ;;  %vm2506_vm14 = vmor %vm377_vm3, %vm442_vm0  ;;  %vm634_vm12 = vcmp.lt.f32.partialorder %v308_v21, 0.0  ;;  %v696_v37 = vsel %vm630_vm11, %v2198_v14, 0.0  ;;  %v826_v39 = vmul.f32 %v2188_v12, %v304_v18 }
  0xa0   : > { %v700_v38 = vsel %vm634_vm12, %v2198_v14, 0.0  ;;  %v830_v40 = vmul.f32 %v2188_v12, %v308_v21  ;;  %v761_v41 = vsel %vm566_vm10, %v2185_v11, %v696_v37  ;;  %vm380_vm13 = vcmp.lt.f32.partialorder %v311_v33, %v2167_v8 }
  0xa1   : > { %1208 = vmatpush1.bf16.xpose.msra.mxu0 %v944_v35  ;;  %v765_v42 = vsel %vm570_vm5, %v2185_v11, %v700_v38  ;;  %vm384_vm2 = vcmp.lt.f32.partialorder %v315_v34, %v2167_v8  ;;  %v890_v43 = vsel %vm2500_vm1, %v826_v39, %v761_v41  ;;  %vm445_vm8 = vcmp.gt.f32.partialorder %v311_v33, %v2169_v9  ;;  %v321_v38 = vld [vmem:[%s2139_s13 + $0x118] sm:$0xff] }
  0xa2   : > { %v894_v44 = vsel %vm2506_vm14, %v830_v40, %v765_v42  ;;  %vm449_vm9 = vcmp.gt.f32.partialorder %v315_v34, %v2169_v9  ;;  %vm2526_vm15 = vmor %vm380_vm13, %vm445_vm8  ;;  %vm573_vm4 = vcmp.gt.f32.partialorder %v311_v33, 0.0  ;;  %vm577_vm7 = vcmp.gt.f32.partialorder %v315_v34, 0.0  ;;  %v325_v39 = vld [vmem:[%s2139_s13 + $0x138] sm:$0xff] }
  0xa3   : > { %v946_v47 = vpack.c.bf16 %v894_v44, %v890_v43  ;;  %vm637_vm3 = vcmp.lt.f32.partialorder %v311_v33, 0.0  ;;  %vm2530_vm6 = vmor %vm384_vm2, %vm449_vm9  ;;  %vm641_vm0 = vcmp.lt.f32.partialorder %v315_v34, 0.0  ;;  %v833_v51 = vmul.f32 %v2188_v12, %v311_v33 }
  0xa4   : > { %v703_v50 = vsel %vm637_vm3, %v2198_v14, 0.0  ;;  %v837_v52 = vmul.f32 %v2188_v12, %v315_v34  ;;  %v707_v53 = vsel %vm641_vm0, %v2198_v14, 0.0  ;;  %vm382_vm1 = vcmp.lt.f32.partialorder %v313_v45, %v2167_v8 }
  0xa5   : > { %1305 = vmatpush1.bf16.xpose.msra.mxu1 %v946_v47  ;;  %v768_v54 = vsel %vm573_vm4, %v2185_v11, %v703_v50  ;;  %vm386_vm10 = vcmp.lt.f32.partialorder %v317_v46, %v2167_v8  ;;  %v772_v55 = vsel %vm577_vm7, %v2185_v11, %v707_v53  ;;  %vm447_vm14 = vcmp.gt.f32.partialorder %v313_v45, %v2169_v9  ;;  %v318_v50 = vld [vmem:[%s2139_s13 + $0x100] sm:$0xff] }
  0xa6   : > { %v897_v56 = vsel %vm2526_vm15, %v833_v51, %v768_v54  ;;  %vm451_vm5 = vcmp.gt.f32.partialorder %v317_v46, %v2169_v9  ;;  %v901_v58 = vsel %vm2530_vm6, %v837_v52, %v772_v55  ;;  %vm2549_vm11 = vmor %vm382_vm1, %vm447_vm14  ;;  %vm575_vm12 = vcmp.gt.f32.partialorder %v313_v45, 0.0  ;;  %v322_v53 = vld [vmem:[%s2139_s13 + $0x120] sm:$0xff] }
  0xa7   : > { %vm579_vm13 = vcmp.gt.f32.partialorder %v317_v46, 0.0  ;;  %vm639_vm2 = vcmp.lt.f32.partialorder %v313_v45, 0.0  ;;  %v949_v61 = vpack.c.bf16 %v901_v58, %v897_v56  ;;  %vm2554_vm8 = vmor %vm386_vm10, %vm451_vm5  ;;  %vm643_vm9 = vcmp.lt.f32.partialorder %v317_v46, 0.0 }
  0xa8   : > { %v705_v63 = vsel %vm639_vm2, %v2198_v14, 0.0  ;;  %v835_v0 = vmul.f32 %v2188_v12, %v313_v45  ;;  %v709_v1 = vsel %vm643_vm9, %v2198_v14, 0.0  ;;  %v839_v3 = vmul.f32 %v2188_v12, %v317_v46 }
  0xa9   : > { %v770_v2 = vsel %vm575_vm12, %v2185_v11, %v705_v63  ;;  %vm379_vm15 = vcmp.lt.f32.partialorder %v310_v57, %v2167_v8  ;;  %1209 = vmatprep.subr.bf16.mxu0 %v949_v61  ;;  %v774_v4 = vsel %vm579_vm13, %v2185_v11, %v709_v1  ;;  %vm383_vm4 = vcmp.lt.f32.partialorder %v314_v60, %v2167_v8  ;;  %v320_v63 = vld [vmem:[%s2139_s13 + $0x110] sm:$0xff] }
  0xaa   : > { %v899_v5 = vsel %vm2549_vm11, %v835_v0, %v770_v2  ;;  %vm444_vm7 = vcmp.gt.f32.partialorder %v310_v57, %v2169_v9  ;;  %v903_v7 = vsel %vm2554_vm8, %v839_v3, %v774_v4  ;;  %vm448_vm3 = vcmp.gt.f32.partialorder %v314_v60, %v2169_v9  ;;  %v324_v2 = vld [vmem:[%s2139_s13 + $0x130] sm:$0xff] }
  0xab   : > { %vm2573_vm6 = vmor %vm379_vm15, %vm444_vm7  ;;  %vm572_vm0 = vcmp.gt.f32.partialorder %v310_v57, 0.0  ;;  %vm576_vm1 = vcmp.gt.f32.partialorder %v314_v60, 0.0  ;;  %v951_v15 = vpack.c.bf16 %v903_v7, %v899_v5  ;;  %vm636_vm14 = vcmp.lt.f32.partialorder %v310_v57, 0.0 }
  0xac   : > { %vm2578_vm10 = vmor %vm383_vm4, %vm448_vm3  ;;  %vm640_vm5 = vcmp.lt.f32.partialorder %v314_v60, 0.0  ;;  %v832_v17 = vmul.f32 %v2188_v12, %v310_v57  ;;  %v702_v18 = vsel %vm636_vm14, %v2198_v14, 0.0  ;;  %v836_v20 = vmul.f32 %v2188_v12, %v314_v60 }
  0xad   : > { %v706_v19 = vsel %vm640_vm5, %v2198_v14, 0.0  ;;  %vm381_vm11 = vcmp.lt.f32.partialorder %v312_v6, %v2167_v8  ;;  %1306 = vmatprep.subr.bf16.mxu1 %v951_v15  ;;  %v767_v21 = vsel %vm572_vm0, %v2185_v11, %v702_v18  ;;  %vm385_vm12 = vcmp.lt.f32.partialorder %v316_v13, %v2167_v8 }
  0xae   : > { %v771_v22 = vsel %vm576_vm1, %v2185_v11, %v706_v19  ;;  %vm446_vm13 = vcmp.gt.f32.partialorder %v312_v6, %v2169_v9  ;;  %v896_v23 = vsel %vm2573_vm6, %v832_v17, %v767_v21  ;;  %vm450_vm2 = vcmp.gt.f32.partialorder %v316_v13, %v2169_v9  ;;  %v327_v19 = vld [vmem:[%s2139_s13 + $0x148] sm:$0xff] }
  0xaf   : > { %v900_v24 = vsel %vm2578_vm10, %v836_v20, %v771_v22  ;;  %vm2596_vm8 = vmor %vm381_vm11, %vm446_vm13  ;;  %vm574_vm9 = vcmp.gt.f32.partialorder %v312_v6, 0.0  ;;  %vm578_vm4 = vcmp.gt.f32.partialorder %v316_v13, 0.0  ;;  %vm638_vm7 = vcmp.lt.f32.partialorder %v312_v6, 0.0  ;;  %v331_v20 = vld [vmem:[%s2139_s13 + $0x168] sm:$0xff] }
  0xb0   : > { %v948_v28 = vpack.c.bf16 %v900_v24, %v896_v23  ;;  %vm2602_vm15 = vmor %vm385_vm12, %vm450_vm2  ;;  %vm642_vm3 = vcmp.lt.f32.partialorder %v316_v13, 0.0  ;;  %v704_v30 = vsel %vm638_vm7, %v2198_v14, 0.0  ;;  %v834_v32 = vmul.f32 %v2188_v12, %v312_v6 }
  0xb1   : > { %v708_v31 = vsel %vm642_vm3, %v2198_v14, 0.0  ;;  %v838_v33 = vmul.f32 %v2188_v12, %v316_v13  ;;  %v769_v34 = vsel %vm574_vm9, %v2185_v11, %v704_v30  ;;  %vm388_vm6 = vcmp.lt.f32.partialorder %v319_v26, %v2167_v8 }
  0xb2   : > { %1210 = vmatpush1.bf16.xpose.msra.mxu0 %v948_v28  ;;  %v773_v35 = vsel %vm578_vm4, %v2185_v11, %v708_v31  ;;  %vm392_vm0 = vcmp.lt.f32.partialorder %v323_v27, %v2167_v8  ;;  %v898_v36 = vsel %vm2596_vm8, %v834_v32, %v769_v34  ;;  %vm453_vm1 = vcmp.gt.f32.partialorder %v319_v26, %v2169_v9  ;;  %v329_v31 = vld [vmem:[%s2139_s13 + $0x158] sm:$0xff] }
  0xb3   : > { %v902_v37 = vsel %vm2602_vm15, %v838_v33, %v773_v35  ;;  %vm457_vm10 = vcmp.gt.f32.partialorder %v323_v27, %v2169_v9  ;;  %vm2622_vm14 = vmor %vm388_vm6, %vm453_vm1  ;;  %vm581_vm5 = vcmp.gt.f32.partialorder %v319_v26, 0.0  ;;  %vm585_vm11 = vcmp.gt.f32.partialorder %v323_v27, 0.0  ;;  %v333_v32 = vld [vmem:[%s2139_s13 + $0x178] sm:$0xff] }
  0xb4   : > { %v950_v40 = vpack.c.bf16 %v902_v37, %v898_v36  ;;  %vm645_vm12 = vcmp.lt.f32.partialorder %v319_v26, 0.0  ;;  %vm2626_vm13 = vmor %vm392_vm0, %vm457_vm10  ;;  %vm649_vm2 = vcmp.lt.f32.partialorder %v323_v27, 0.0  ;;  %v841_v44 = vmul.f32 %v2188_v12, %v319_v26 }
  0xb5   : > { %v711_v43 = vsel %vm645_vm12, %v2198_v14, 0.0  ;;  %v845_v45 = vmul.f32 %v2188_v12, %v323_v27  ;;  %v715_v46 = vsel %vm649_vm2, %v2198_v14, 0.0  ;;  %vm390_vm8 = vcmp.lt.f32.partialorder %v321_v38, %v2167_v8 }
  0xb6   : > { %1307 = vmatpush1.bf16.xpose.msra.mxu1 %v950_v40  ;;  %v776_v47 = vsel %vm581_vm5, %v2185_v11, %v711_v43  ;;  %vm394_vm9 = vcmp.lt.f32.partialorder %v325_v39, %v2167_v8  ;;  %v780_v48 = vsel %vm585_vm11, %v2185_v11, %v715_v46  ;;  %vm455_vm15 = vcmp.gt.f32.partialorder %v321_v38, %v2169_v9  ;;  %v326_v43 = vld [vmem:[%s2139_s13 + $0x140] sm:$0xff] }
  0xb7   : > { %v905_v49 = vsel %vm2622_vm14, %v841_v44, %v776_v47  ;;  %vm459_vm4 = vcmp.gt.f32.partialorder %v325_v39, %v2169_v9  ;;  %v909_v51 = vsel %vm2626_vm13, %v845_v45, %v780_v48  ;;  %vm2645_vm7 = vmor %vm390_vm8, %vm455_vm15  ;;  %vm583_vm3 = vcmp.gt.f32.partialorder %v321_v38, 0.0  ;;  %v330_v46 = vld [vmem:[%s2139_s13 + $0x160] sm:$0xff] }
  0xb8   : > { %vm587_vm6 = vcmp.gt.f32.partialorder %v325_v39, 0.0  ;;  %vm647_vm0 = vcmp.lt.f32.partialorder %v321_v38, 0.0  ;;  %v953_v54 = vpack.c.bf16 %v909_v51, %v905_v49  ;;  %vm2650_vm1 = vmor %vm394_vm9, %vm459_vm4  ;;  %vm651_vm10 = vcmp.lt.f32.partialorder %v325_v39, 0.0 }
  0xb9   : > { %v713_v56 = vsel %vm647_vm0, %v2198_v14, 0.0  ;;  %v843_v57 = vmul.f32 %v2188_v12, %v321_v38  ;;  %v717_v58 = vsel %vm651_vm10, %v2198_v14, 0.0  ;;  %v847_v60 = vmul.f32 %v2188_v12, %v325_v39 }
  0xba   : > { %v778_v59 = vsel %vm583_vm3, %v2185_v11, %v713_v56  ;;  %vm387_vm14 = vcmp.lt.f32.partialorder %v318_v50, %v2167_v8  ;;  %1211 = vmatprep.subr.bf16.mxu0 %v953_v54  ;;  %v782_v61 = vsel %vm587_vm6, %v2185_v11, %v717_v58  ;;  %vm391_vm5 = vcmp.lt.f32.partialorder %v322_v53, %v2167_v8  ;;  %v328_v56 = vld [vmem:[%s2139_s13 + $0x150] sm:$0xff] }
  0xbb   : > { %v907_v62 = vsel %vm2645_vm7, %v843_v57, %v778_v59  ;;  %vm452_vm11 = vcmp.gt.f32.partialorder %v318_v50, %v2169_v9  ;;  %v911_v0 = vsel %vm2650_vm1, %v847_v60, %v782_v61  ;;  %vm456_vm12 = vcmp.gt.f32.partialorder %v322_v53, %v2169_v9  ;;  %v332_v59 = vld [vmem:[%s2139_s13 + $0x170] sm:$0xff] }
  0xbc   : > { %vm2669_vm13 = vmor %vm387_vm14, %vm452_vm11  ;;  %vm580_vm2 = vcmp.gt.f32.partialorder %v318_v50, 0.0  ;;  %vm584_vm8 = vcmp.gt.f32.partialorder %v322_v53, 0.0  ;;  %v955_v3 = vpack.c.bf16 %v911_v0, %v907_v62  ;;  %vm644_vm15 = vcmp.lt.f32.partialorder %v318_v50, 0.0 }
  0xbd   : > { %vm2674_vm9 = vmor %vm391_vm5, %vm456_vm12  ;;  %vm648_vm4 = vcmp.lt.f32.partialorder %v322_v53, 0.0  ;;  %v840_v5 = vmul.f32 %v2188_v12, %v318_v50  ;;  %v710_v6 = vsel %vm644_vm15, %v2198_v14, 0.0  ;;  %v844_v10 = vmul.f32 %v2188_v12, %v322_v53 }
  0xbe   : > { %v714_v7 = vsel %vm648_vm4, %v2198_v14, 0.0  ;;  %vm389_vm7 = vcmp.lt.f32.partialorder %v320_v63, %v2167_v8  ;;  %1308 = vmatprep.subr.bf16.mxu1 %v955_v3  ;;  %v775_v13 = vsel %vm580_vm2, %v2185_v11, %v710_v6  ;;  %vm393_vm3 = vcmp.lt.f32.partialorder %v324_v2, %v2167_v8 }
  0xbf   : > { %v779_v15 = vsel %vm584_vm8, %v2185_v11, %v714_v7  ;;  %vm454_vm6 = vcmp.gt.f32.partialorder %v320_v63, %v2169_v9  ;;  %v904_v16 = vsel %vm2669_vm13, %v840_v5, %v775_v13  ;;  %vm458_vm0 = vcmp.gt.f32.partialorder %v324_v2, %v2169_v9  ;;  %v335_v7 = vld [vmem:[%s2139_s13 + $0x188] sm:$0xff] }
  0xc0   : > { %v908_v17 = vsel %vm2674_vm9, %v844_v10, %v779_v15  ;;  %vm2692_vm1 = vmor %vm389_vm7, %vm454_vm6  ;;  %vm582_vm10 = vcmp.gt.f32.partialorder %v320_v63, 0.0  ;;  %vm586_vm5 = vcmp.gt.f32.partialorder %v324_v2, 0.0  ;;  %vm646_vm11 = vcmp.lt.f32.partialorder %v320_v63, 0.0  ;;  %v339_v10 = vld [vmem:[%s2139_s13 + $0x1a8] sm:$0xff] }
  0xc1   : > { %v952_v21 = vpack.c.bf16 %v908_v17, %v904_v16  ;;  %vm2698_vm14 = vmor %vm393_vm3, %vm458_vm0  ;;  %vm650_vm12 = vcmp.lt.f32.partialorder %v324_v2, 0.0  ;;  %v712_v23 = vsel %vm646_vm11, %v2198_v14, 0.0  ;;  %v842_v25 = vmul.f32 %v2188_v12, %v320_v63 }
  0xc2   : > { %v716_v24 = vsel %vm650_vm12, %v2198_v14, 0.0  ;;  %v846_v26 = vmul.f32 %v2188_v12, %v324_v2  ;;  %v777_v27 = vsel %vm582_vm10, %v2185_v11, %v712_v23  ;;  %vm396_vm13 = vcmp.lt.f32.partialorder %v327_v19, %v2167_v8 }
  0xc3   : > { %1212 = vmatpush1.bf16.xpose.msra.mxu0 %v952_v21  ;;  %v781_v28 = vsel %vm586_vm5, %v2185_v11, %v716_v24  ;;  %vm400_vm2 = vcmp.lt.f32.partialorder %v331_v20, %v2167_v8  ;;  %v906_v29 = vsel %vm2692_vm1, %v842_v25, %v777_v27  ;;  %vm461_vm8 = vcmp.gt.f32.partialorder %v327_v19, %v2169_v9  ;;  %v337_v24 = vld [vmem:[%s2139_s13 + $0x198] sm:$0xff] }
  0xc4   : > { %v910_v30 = vsel %vm2698_vm14, %v846_v26, %v781_v28  ;;  %vm465_vm9 = vcmp.gt.f32.partialorder %v331_v20, %v2169_v9  ;;  %vm2718_vm15 = vmor %vm396_vm13, %vm461_vm8  ;;  %vm589_vm4 = vcmp.gt.f32.partialorder %v327_v19, 0.0  ;;  %vm593_vm7 = vcmp.gt.f32.partialorder %v331_v20, 0.0  ;;  %v341_v25 = vld [vmem:[%s2139_s13 + $0x1b8] sm:$0xff] }
  0xc5   : > { %v954_v33 = vpack.c.bf16 %v910_v30, %v906_v29  ;;  %vm653_vm3 = vcmp.lt.f32.partialorder %v327_v19, 0.0  ;;  %vm2722_vm6 = vmor %vm400_vm2, %vm465_vm9  ;;  %vm657_vm0 = vcmp.lt.f32.partialorder %v331_v20, 0.0  ;;  %v849_v37 = vmul.f32 %v2188_v12, %v327_v19 }
  0xc6   : > { %v719_v36 = vsel %vm653_vm3, %v2198_v14, 0.0  ;;  %v853_v38 = vmul.f32 %v2188_v12, %v331_v20  ;;  %v723_v39 = vsel %vm657_vm0, %v2198_v14, 0.0  ;;  %vm398_vm1 = vcmp.lt.f32.partialorder %v329_v31, %v2167_v8 }
  0xc7   : > { %1309 = vmatpush1.bf16.xpose.msra.mxu1 %v954_v33  ;;  %v784_v40 = vsel %vm589_vm4, %v2185_v11, %v719_v36  ;;  %vm402_vm10 = vcmp.lt.f32.partialorder %v333_v32, %v2167_v8  ;;  %v788_v41 = vsel %vm593_vm7, %v2185_v11, %v723_v39  ;;  %vm463_vm14 = vcmp.gt.f32.partialorder %v329_v31, %v2169_v9  ;;  %v334_v36 = vld [vmem:[%s2139_s13 + $0x180] sm:$0xff] }
  0xc8   : > { %v913_v42 = vsel %vm2718_vm15, %v849_v37, %v784_v40  ;;  %vm467_vm5 = vcmp.gt.f32.partialorder %v333_v32, %v2169_v9  ;;  %v917_v44 = vsel %vm2722_vm6, %v853_v38, %v788_v41  ;;  %vm2741_vm11 = vmor %vm398_vm1, %vm463_vm14  ;;  %vm591_vm12 = vcmp.gt.f32.partialorder %v329_v31, 0.0  ;;  %v338_v39 = vld [vmem:[%s2139_s13 + $0x1a0] sm:$0xff] }
  0xc9   : > { %vm595_vm13 = vcmp.gt.f32.partialorder %v333_v32, 0.0  ;;  %vm655_vm2 = vcmp.lt.f32.partialorder %v329_v31, 0.0  ;;  %v957_v47 = vpack.c.bf16 %v917_v44, %v913_v42  ;;  %vm2746_vm8 = vmor %vm402_vm10, %vm467_vm5  ;;  %vm659_vm9 = vcmp.lt.f32.partialorder %v333_v32, 0.0 }
  0xca   : > { %v721_v49 = vsel %vm655_vm2, %v2198_v14, 0.0  ;;  %v851_v50 = vmul.f32 %v2188_v12, %v329_v31  ;;  %v725_v51 = vsel %vm659_vm9, %v2198_v14, 0.0  ;;  %v855_v53 = vmul.f32 %v2188_v12, %v333_v32 }
  0xcb   : > { %v786_v52 = vsel %vm591_vm12, %v2185_v11, %v721_v49  ;;  %vm395_vm15 = vcmp.lt.f32.partialorder %v326_v43, %v2167_v8  ;;  %1213 = vmatprep.subr.bf16.mxu0 %v957_v47  ;;  %v790_v54 = vsel %vm595_vm13, %v2185_v11, %v725_v51  ;;  %vm399_vm4 = vcmp.lt.f32.partialorder %v330_v46, %v2167_v8  ;;  %v336_v49 = vld [vmem:[%s2139_s13 + $0x190] sm:$0xff] }
  0xcc   : > { %v915_v55 = vsel %vm2741_vm11, %v851_v50, %v786_v52  ;;  %vm460_vm7 = vcmp.gt.f32.partialorder %v326_v43, %v2169_v9  ;;  %v919_v57 = vsel %vm2746_vm8, %v855_v53, %v790_v54  ;;  %vm464_vm3 = vcmp.gt.f32.partialorder %v330_v46, %v2169_v9  ;;  %v340_v52 = vld [vmem:[%s2139_s13 + $0x1b0] sm:$0xff] }
  0xcd   : > { %vm2765_vm6 = vmor %vm395_vm15, %vm460_vm7  ;;  %vm588_vm0 = vcmp.gt.f32.partialorder %v326_v43, 0.0  ;;  %vm592_vm1 = vcmp.gt.f32.partialorder %v330_v46, 0.0  ;;  %v959_v60 = vpack.c.bf16 %v919_v57, %v915_v55  ;;  %vm652_vm14 = vcmp.lt.f32.partialorder %v326_v43, 0.0 }
  0xce   : > { %vm2770_vm10 = vmor %vm399_vm4, %vm464_vm3  ;;  %vm656_vm5 = vcmp.lt.f32.partialorder %v330_v46, 0.0  ;;  %v848_v62 = vmul.f32 %v2188_v12, %v326_v43  ;;  %v718_v63 = vsel %vm652_vm14, %v2198_v14, 0.0  ;;  %v852_v1 = vmul.f32 %v2188_v12, %v330_v46 }
  0xcf   : > { %v722_v0 = vsel %vm656_vm5, %v2198_v14, 0.0  ;;  %vm397_vm11 = vcmp.lt.f32.partialorder %v328_v56, %v2167_v8  ;;  %1310 = vmatprep.subr.bf16.mxu1 %v959_v60  ;;  %v783_v2 = vsel %vm588_vm0, %v2185_v11, %v718_v63  ;;  %vm401_vm12 = vcmp.lt.f32.partialorder %v332_v59, %v2167_v8 }
  0xd0   : > { %v787_v3 = vsel %vm592_vm1, %v2185_v11, %v722_v0  ;;  %vm462_vm13 = vcmp.gt.f32.partialorder %v328_v56, %v2169_v9  ;;  %v912_v4 = vsel %vm2765_vm6, %v848_v62, %v783_v2  ;;  %vm466_vm2 = vcmp.gt.f32.partialorder %v332_v59, %v2169_v9  ;;  %v343_v0 = vld [vmem:[%s2139_s13 + $0x1c8] sm:$0xff] }
  0xd1   : > { %v916_v5 = vsel %vm2770_vm10, %v852_v1, %v787_v3  ;;  %vm2788_vm8 = vmor %vm397_vm11, %vm462_vm13  ;;  %vm590_vm9 = vcmp.gt.f32.partialorder %v328_v56, 0.0  ;;  %vm594_vm4 = vcmp.gt.f32.partialorder %v332_v59, 0.0  ;;  %vm654_vm7 = vcmp.lt.f32.partialorder %v328_v56, 0.0  ;;  %v347_v1 = vld [vmem:[%s2139_s13 + $0x1e8] sm:$0xff] }
  0xd2   : > { %v956_v13 = vpack.c.bf16 %v916_v5, %v912_v4  ;;  %vm2794_vm15 = vmor %vm401_vm12, %vm466_vm2  ;;  %vm658_vm3 = vcmp.lt.f32.partialorder %v332_v59, 0.0  ;;  %v720_v16 = vsel %vm654_vm7, %v2198_v14, 0.0  ;;  %v850_v18 = vmul.f32 %v2188_v12, %v328_v56  ;;  %v1711_v3 = vld [vmem:[#allocation6 + $0x8] ss:$16 sps:$4 sm:$0xff]  }
  0xd3   : > { %v724_v17 = vsel %vm658_vm3, %v2198_v14, 0.0  ;;  %v854_v19 = vmul.f32 %v2188_v12, %v332_v59  ;;  %v785_v20 = vsel %vm590_vm9, %v2185_v11, %v720_v16  ;;  %vm404_vm6 = vcmp.lt.f32.partialorder %v335_v7, %v2167_v8 }
  0xd4   : > { %1214 = vmatpush1.bf16.xpose.msra.mxu0 %v956_v13  ;;  %v789_v21 = vsel %vm594_vm4, %v2185_v11, %v724_v17  ;;  %vm408_vm0 = vcmp.lt.f32.partialorder %v339_v10, %v2167_v8  ;;  %v914_v22 = vsel %vm2788_vm8, %v850_v18, %v785_v20  ;;  %vm469_vm1 = vcmp.gt.f32.partialorder %v335_v7, %v2169_v9  ;;  %v345_v17 = vld [vmem:[%s2139_s13 + $0x1d8] sm:$0xff]  ;;  %v1738_v20 = vld [vmem:[#allocation6 + $0xa4] ss:$16 sps:$4 sm:$0xff]  }
  0xd5   : > { %v918_v23 = vsel %vm2794_vm15, %v854_v19, %v789_v21  ;;  %vm473_vm10 = vcmp.gt.f32.partialorder %v339_v10, %v2169_v9  ;;  %vm2814_vm14 = vmor %vm404_vm6, %vm469_vm1  ;;  %vm597_vm5 = vcmp.gt.f32.partialorder %v335_v7, 0.0  ;;  %vm601_vm11 = vcmp.gt.f32.partialorder %v339_v10, 0.0  ;;  %v349_v18 = vld [vmem:[%s2139_s13 + $0x1f8] sm:$0xff] }
  0xd6   : > { %v958_v26 = vpack.c.bf16 %v918_v23, %v914_v22  ;;  %vm661_vm12 = vcmp.lt.f32.partialorder %v335_v7, 0.0  ;;  %vm2818_vm13 = vmor %vm408_vm0, %vm473_vm10  ;;  %vm665_vm2 = vcmp.lt.f32.partialorder %v339_v10, 0.0  ;;  %v857_v30 = vmul.f32 %v2188_v12, %v335_v7  ;;  %v1737_v21 = vld [vmem:[#allocation6 + $0x88] ss:$16 sps:$4 sm:$0xff]  }
  0xd7   : > { %v727_v29 = vsel %vm661_vm12, %v2198_v14, 0.0  ;;  %v861_v31 = vmul.f32 %v2188_v12, %v339_v10  ;;  %v731_v32 = vsel %vm665_vm2, %v2198_v14, 0.0  ;;  %vm406_vm8 = vcmp.lt.f32.partialorder %v337_v24, %v2167_v8 }
  0xd8   : > { %1311 = vmatpush1.bf16.xpose.msra.mxu1 %v958_v26  ;;  %v792_v33 = vsel %vm597_vm5, %v2185_v11, %v727_v29  ;;  %vm410_vm9 = vcmp.lt.f32.partialorder %v341_v25, %v2167_v8  ;;  %v796_v34 = vsel %vm601_vm11, %v2185_v11, %v731_v32  ;;  %vm471_vm15 = vcmp.gt.f32.partialorder %v337_v24, %v2169_v9  ;;  %v342_v29 = vld [vmem:[%s2139_s13 + $0x1c0] sm:$0xff] }
  0xd9   : > { %v921_v35 = vsel %vm2814_vm14, %v857_v30, %v792_v33  ;;  %vm475_vm4 = vcmp.gt.f32.partialorder %v341_v25, %v2169_v9  ;;  %v925_v37 = vsel %vm2818_vm13, %v861_v31, %v796_v34  ;;  %vm2837_vm7 = vmor %vm406_vm8, %vm471_vm15  ;;  %vm599_vm3 = vcmp.gt.f32.partialorder %v337_v24, 0.0  ;;  %v346_v32 = vld [vmem:[%s2139_s13 + $0x1e0] sm:$0xff] }
  0xda   : > { %vm603_vm6 = vcmp.gt.f32.partialorder %v341_v25, 0.0  ;;  %vm663_vm0 = vcmp.lt.f32.partialorder %v337_v24, 0.0  ;;  %v961_v40 = vpack.c.bf16 %v925_v37, %v921_v35  ;;  %vm2842_vm1 = vmor %vm410_vm9, %vm475_vm4  ;;  %vm667_vm10 = vcmp.lt.f32.partialorder %v341_v25, 0.0  ;;  %v1754_v31 = vld [vmem:[#allocation6 + $0xe0] ss:$16 sps:$4 sm:$0xff]  }
  0xdb   : > { %v729_v42 = vsel %vm663_vm0, %v2198_v14, 0.0  ;;  %v859_v43 = vmul.f32 %v2188_v12, %v337_v24  ;;  %v733_v44 = vsel %vm667_vm10, %v2198_v14, 0.0  ;;  %v863_v46 = vmul.f32 %v2188_v12, %v341_v25 }
  0xdc   : > { %v794_v45 = vsel %vm599_vm3, %v2185_v11, %v729_v42  ;;  %vm403_vm14 = vcmp.lt.f32.partialorder %v334_v36, %v2167_v8  ;;  %1215 = vmatprep.subr.bf16.mxu0 %v961_v40  ;;  %v798_v47 = vsel %vm603_vm6, %v2185_v11, %v733_v44  ;;  %vm407_vm5 = vcmp.lt.f32.partialorder %v338_v39, %v2167_v8  ;;  %v344_v42 = vld [vmem:[%s2139_s13 + $0x1d0] sm:$0xff] }
  0xdd   : > { %v923_v48 = vsel %vm2837_vm7, %v859_v43, %v794_v45  ;;  %vm468_vm11 = vcmp.gt.f32.partialorder %v334_v36, %v2169_v9  ;;  %v927_v50 = vsel %vm2842_vm1, %v863_v46, %v798_v47  ;;  %vm472_vm12 = vcmp.gt.f32.partialorder %v338_v39, %v2169_v9  ;;  %v348_v45 = vld [vmem:[%s2139_s13 + $0x1f0] sm:$0xff] }
  0xde   : > { %vm2861_vm13 = vmor %vm403_vm14, %vm468_vm11  ;;  %vm596_vm2 = vcmp.gt.f32.partialorder %v334_v36, 0.0  ;;  %vm600_vm8 = vcmp.gt.f32.partialorder %v338_v39, 0.0  ;;  %v963_v53 = vpack.c.bf16 %v927_v50, %v923_v48  ;;  %vm660_vm15 = vcmp.lt.f32.partialorder %v334_v36, 0.0 }
  0xdf   : > { %vm2866_vm9 = vmor %vm407_vm5, %vm472_vm12  ;;  %vm664_vm4 = vcmp.lt.f32.partialorder %v338_v39, 0.0  ;;  %v856_v55 = vmul.f32 %v2188_v12, %v334_v36  ;;  %v726_v56 = vsel %vm660_vm15, %v2198_v14, 0.0  ;;  %v860_v58 = vmul.f32 %v2188_v12, %v338_v39 }
  0xe0   : > { %v730_v57 = vsel %vm664_vm4, %v2198_v14, 0.0  ;;  %vm405_vm7 = vcmp.lt.f32.partialorder %v336_v49, %v2167_v8  ;;  %1312 = vmatprep.subr.bf16.mxu1 %v963_v53  ;;  %v791_v59 = vsel %vm596_vm2, %v2185_v11, %v726_v56  ;;  %vm409_vm3 = vcmp.lt.f32.partialorder %v340_v52, %v2167_v8 }
  0xe1   : > { %v795_v60 = vsel %vm600_vm8, %v2185_v11, %v730_v57  ;;  %vm470_vm6 = vcmp.gt.f32.partialorder %v336_v49, %v2169_v9  ;;  %v920_v61 = vsel %vm2861_vm13, %v856_v55, %v791_v59  ;;  %vm474_vm0 = vcmp.gt.f32.partialorder %v340_v52, %v2169_v9 }
  0xe2   : > { %v924_v62 = vsel %vm2866_vm9, %v860_v58, %v795_v60  ;;  %vm2884_vm1 = vmor %vm405_vm7, %vm470_vm6  ;;  %vm598_vm10 = vcmp.gt.f32.partialorder %v336_v49, 0.0  ;;  %vm602_vm5 = vcmp.gt.f32.partialorder %v340_v52, 0.0  ;;  %vm662_vm11 = vcmp.lt.f32.partialorder %v336_v49, 0.0 }
  0xe3   : > { %v960_v2 = vpack.c.bf16 %v924_v62, %v920_v61  ;;  %vm2890_vm14 = vmor %vm409_vm3, %vm474_vm0  ;;  %vm666_vm12 = vcmp.lt.f32.partialorder %v340_v52, 0.0  ;;  %v728_v4 = vsel %vm662_vm11, %v2198_v14, 0.0  ;;  %v858_v6 = vmul.f32 %v2188_v12, %v336_v49 }
  0xe4   : > { %v732_v5 = vsel %vm666_vm12, %v2198_v14, 0.0  ;;  %v862_v7 = vmul.f32 %v2188_v12, %v340_v52  ;;  %v793_v10 = vsel %vm598_vm10, %v2185_v11, %v728_v4  ;;  %vm412_vm13 = vcmp.lt.f32.partialorder %v343_v0, %v2167_v8  ;;  %v1718_v4 = vld [vmem:[#allocation6 + $0x20] ss:$16 sps:$4 sm:$0xff]  }
  0xe5   : > { %1216 = vmatpush1.bf16.xpose.msra.mxu0 %v960_v2  ;;  %v797_v13 = vsel %vm602_vm5, %v2185_v11, %v732_v5  ;;  %vm416_vm2 = vcmp.lt.f32.partialorder %v347_v1, %v2167_v8  ;;  %v922_v15 = vsel %vm2884_vm1, %v858_v6, %v793_v10  ;;  %vm477_vm8 = vcmp.gt.f32.partialorder %v343_v0, %v2169_v9  ;;  %v1714_v2 = vld [vmem:[#allocation6 + $0x24] ss:$16 sps:$4 sm:$0xff]   ;;  %v1719_v5 = vld [vmem:[#allocation6 + $0x28] ss:$16 sps:$4 sm:$0xff]   ;;  %v1724_v6 = vld [vmem:[#allocation6 + $0x40] ss:$16 sps:$4 sm:$0xff]  }
  0xe6   : > { %v926_v16 = vsel %vm2890_vm14, %v862_v7, %v797_v13  ;;  %vm481_vm9 = vcmp.gt.f32.partialorder %v347_v1, %v2169_v9  ;;  %vm2910_vm15 = vmor %vm412_vm13, %vm477_vm8  ;;  %vm605_vm4 = vcmp.gt.f32.partialorder %v343_v0, 0.0  ;;  %vm609_vm7 = vcmp.gt.f32.partialorder %v347_v1, 0.0  ;;  %v1726_v7 = vld [vmem:[#allocation6 + $0x64] ss:$16 sps:$4 sm:$0xff]   ;;  %v1725_v10 = vld [vmem:[#allocation6 + $0x48] ss:$16 sps:$4 sm:$0xff]  }
  0xe7   : > { %v962_v19 = vpack.c.bf16 %v926_v16, %v922_v15  ;;  %vm669_vm3 = vcmp.lt.f32.partialorder %v343_v0, 0.0  ;;  %vm2914_vm6 = vmor %vm416_vm2, %vm481_vm9  ;;  %vm673_vm0 = vcmp.lt.f32.partialorder %v347_v1, 0.0  ;;  %v865_v23 = vmul.f32 %v2188_v12, %v343_v0  ;;  %v1728_v13 = vld [vmem:[#allocation6 + $0x6c] ss:$16 sps:$4 sm:$0xff]   ;;  %v1730_v15 = vld [vmem:[#allocation6 + $0x60] ss:$16 sps:$4 sm:$0xff]  }
  0xe8   : > { %v735_v22 = vsel %vm669_vm3, %v2198_v14, 0.0  ;;  %v869_v24 = vmul.f32 %v2188_v12, %v347_v1  ;;  %v739_v25 = vsel %vm673_vm0, %v2198_v14, 0.0  ;;  %vm414_vm1 = vcmp.lt.f32.partialorder %v345_v17, %v2167_v8  ;;  %v1708_v1 = vld [vmem:[#allocation6] ss:$16 sps:$4 sm:$0xff]   ;;  %v1732_v16 = vld [vmem:[#allocation6 + $0x84] ss:$16 sps:$4 sm:$0xff]  }
  0xe9   : > { %1313 = vmatpush1.bf16.xpose.msra.mxu1 %v962_v19  ;;  %v800_v26 = vsel %vm605_vm4, %v2185_v11, %v735_v22  ;;  %vm418_vm10 = vcmp.lt.f32.partialorder %v349_v18, %v2167_v8  ;;  %v804_v27 = vsel %vm609_vm7, %v2185_v11, %v739_v25  ;;  %vm479_vm14 = vcmp.gt.f32.partialorder %v345_v17, %v2169_v9  ;;  %v1736_v19 = vld [vmem:[#allocation6 + $0x80] ss:$16 sps:$4 sm:$0xff]   ;;  %v1740_v22 = vld [vmem:[#allocation6 + $0xac] ss:$16 sps:$4 sm:$0xff]   ;;  %v1743_v25 = vld [vmem:[#allocation6 + $0xa8] ss:$16 sps:$4 sm:$0xff]  }
  0xea   : > { %v929_v28 = vsel %vm2910_vm15, %v865_v23, %v800_v26  ;;  %vm483_vm5 = vcmp.gt.f32.partialorder %v349_v18, %v2169_v9  ;;  %v933_v30 = vsel %vm2914_vm6, %v869_v24, %v804_v27  ;;  %vm2933_vm11 = vmor %vm414_vm1, %vm479_vm14  ;;  %vm607_vm12 = vcmp.gt.f32.partialorder %v345_v17, 0.0  ;;  %v1742_v23 = vld [vmem:[#allocation6 + $0xa0] ss:$16 sps:$4 sm:$0xff]   ;;  %v1744_v24 = vld [vmem:[#allocation6 + $0xc4] ss:$16 sps:$4 sm:$0xff]  }
  0xeb   : > { %vm611_vm13 = vcmp.gt.f32.partialorder %v349_v18, 0.0  ;;  %vm671_vm2 = vcmp.lt.f32.partialorder %v345_v17, 0.0  ;;  %v965_v33 = vpack.c.bf16 %v933_v30, %v929_v28  ;;  %vm2938_vm8 = vmor %vm418_vm10, %vm483_vm5  ;;  %vm675_vm9 = vcmp.lt.f32.partialorder %v349_v18, 0.0  ;;  %v1746_v26 = vld [vmem:[#allocation6 + $0xcc] ss:$16 sps:$4 sm:$0xff]  }
  0xec   : > { %v737_v35 = vsel %vm671_vm2, %v2198_v14, 0.0  ;;  %v867_v36 = vmul.f32 %v2188_v12, %v345_v17  ;;  %v741_v37 = vsel %vm675_vm9, %v2198_v14, 0.0  ;;  %v871_v39 = vmul.f32 %v2188_v12, %v349_v18  ;;  %v1731_v17 = vld [vmem:[#allocation6 + $0x68] ss:$16 sps:$4 sm:$0xff]   ;;  %v1734_v18 = vld [vmem:[#allocation6 + $0x8c] ss:$16 sps:$4 sm:$0xff]  }
  0xed   : > { %v802_v38 = vsel %vm607_vm12, %v2185_v11, %v737_v35  ;;  %vm411_vm15 = vcmp.lt.f32.partialorder %v342_v29, %v2167_v8  ;;  %1217 = vmatprep.subr.bf16.mxu0 %v965_v33  ;;  %v806_v40 = vsel %vm611_vm13, %v2185_v11, %v741_v37  ;;  %vm415_vm4 = vcmp.lt.f32.partialorder %v346_v32, %v2167_v8  ;;  %v1748_v27 = vld [vmem:[#allocation6 + $0xc0] ss:$16 sps:$4 sm:$0xff]   ;;  %v1750_v28 = vld [vmem:[#allocation6 + $0xe4] ss:$16 sps:$4 sm:$0xff]   ;;  %v1752_v30 = vld [vmem:[#allocation6 + $0xec] ss:$16 sps:$4 sm:$0xff]  }
  0xee   : > { %v931_v41 = vsel %vm2933_vm11, %v867_v36, %v802_v38  ;;  %vm476_vm7 = vcmp.gt.f32.partialorder %v342_v29, %v2169_v9  ;;  %v935_v43 = vsel %vm2938_vm8, %v871_v39, %v806_v40  ;;  %vm480_vm3 = vcmp.gt.f32.partialorder %v346_v32, %v2169_v9  ;;  %v2998_v37 = vld [vmem:[%s284_s5] ss:$0 sm:$0xff] }
  0xef   : > { %vm2957_vm6 = vmor %vm411_vm15, %vm476_vm7  ;;  %vm604_vm0 = vcmp.gt.f32.partialorder %v342_v29, 0.0  ;;  %vm608_vm1 = vcmp.gt.f32.partialorder %v346_v32, 0.0  ;;  %v967_v46 = vpack.c.bf16 %v935_v43, %v931_v41  ;;  %vm668_vm14 = vcmp.lt.f32.partialorder %v342_v29, 0.0 }
  0xf0   : > { %vm2962_vm10 = vmor %vm415_vm4, %vm480_vm3  ;;  %vm672_vm5 = vcmp.lt.f32.partialorder %v346_v32, 0.0  ;;  %v864_v48 = vmul.f32 %v2188_v12, %v342_v29  ;;  %v734_v49 = vsel %vm668_vm14, %v2198_v14, 0.0  ;;  %v868_v51 = vmul.f32 %v2188_v12, %v346_v32  ;;  %v1749_v29 = vld [vmem:[#allocation6 + $0xc8] ss:$16 sps:$4 sm:$0xff]  }
  0xf1   : > { %v738_v50 = vsel %vm672_vm5, %v2198_v14, 0.0  ;;  %vm413_vm11 = vcmp.lt.f32.partialorder %v344_v42, %v2167_v8  ;;  %1314 = vmatprep.subr.bf16.mxu1 %v967_v46  ;;  %v799_v52 = vsel %vm604_vm0, %v2185_v11, %v734_v49  ;;  %vm417_vm12 = vcmp.lt.f32.partialorder %v348_v45, %v2167_v8  ;;  %v1755_v32 = vld [vmem:[#allocation6 + $0xe8] ss:$16 sps:$4 sm:$0xff]  }
  0xf2   : > { %v803_v53 = vsel %vm608_vm1, %v2185_v11, %v738_v50  ;;  %vm478_vm13 = vcmp.gt.f32.partialorder %v344_v42, %v2169_v9  ;;  %v928_v54 = vsel %vm2957_vm6, %v864_v48, %v799_v52  ;;  %vm482_vm2 = vcmp.gt.f32.partialorder %v348_v45, %v2169_v9 }
  0xf3   : > { %v932_v55 = vsel %vm2962_vm10, %v868_v51, %v803_v53  ;;  %vm2980_vm8 = vmor %vm413_vm11, %vm478_vm13  ;;  %vm606_vm9 = vcmp.gt.f32.partialorder %v344_v42, 0.0  ;;  %vm610_vm4 = vcmp.gt.f32.partialorder %v348_v45, 0.0  ;;  %vm670_vm7 = vcmp.lt.f32.partialorder %v344_v42, 0.0 }
  0xf4   : > { %v964_v57 = vpack.c.bf16 %v932_v55, %v928_v54  ;;  %vm546_vm15 = vmor %vm417_vm12, %vm482_vm2  ;;  %vm674_vm3 = vcmp.lt.f32.partialorder %v348_v45, 0.0  ;;  %v736_v8 = vsel %vm670_vm7, %v2198_v14, 0.0  ;;  %v866_v59 = vmul.f32 %v2188_v12, %v344_v42 }
  0xf5   : > { %v740_v58 = vsel %vm674_vm3, %v2198_v14, 0.0  ;;  %v870_v60 = vmul.f32 %v2188_v12, %v348_v45  ;;  %v801_v9 = vsel %vm606_vm9, %v2185_v11, %v736_v8  ;;  %v1716_v14 = vld [vmem:[#allocation6 + $0x2c] ss:$16 sps:$4 sm:$0xff]   ;;  %v1720_v12 = vld [vmem:[#allocation6 + $0x44] ss:$16 sps:$4 sm:$0xff]  }
  0xf6   : > { %1218 = vmatpush1.bf16.xpose.msra.mxu0 %v964_v57  ;;  %v805_v61 = vsel %vm610_vm4, %v2185_v11, %v740_v58  ;;  %v930_v62 = vsel %vm2980_vm8, %v866_v59, %v801_v9  ;;  %v1722_v11 = vld [vmem:[#allocation6 + $0x4c] ss:$16 sps:$4 sm:$0xff]  }
  0xf7   : > { %v934_v63 = vsel %vm546_vm15, %v870_v60, %v805_v61 }
  0xf8   : > { %v966_v0 = vpack.c.bf16 %v934_v63, %v930_v62 }
  0xfa   : > { %1315 = vmatpush1.bf16.xpose.msra.mxu1 %v966_v0 }
  0xfd   : > { %1236 = vmatmul.mubr.bf16.vlgmr.msra.gmra.mrb[0].mxu0 %v1708_v1 }
  0xfe   : > { %1243 = vmatprep.mubr.bf16.mxu0 %v1714_v2 }
 0x101   : > { %1333 = vmatmul.mubr.bf16.vlgmr.msra.gmra.mrb[0].mxu1 %v1711_v3 }
 0x102   : > { %1340 = vmatprep.mubr.bf16.mxu1 %v1716_v14 }
 0x105   : > { %1244 = vmatmul.mubr.bf16.gmra.mrb[4].mxu0 %v1718_v4 }
 0x106   : > { %1251 = vmatprep.mubr.bf16.mxu0 %v1720_v12 }
 0x109   : > { %1341 = vmatmul.mubr.bf16.gmra.mrb[4].mxu1 %v1719_v5 }
 0x10a   : > { %1348 = vmatprep.mubr.bf16.mxu1 %v1722_v11 }
 0x10d   : > { %1252 = vmatmul.mubr.bf16.gmra.mrb[8].mxu0 %v1724_v6 }
 0x10e   : > { %1259 = vmatprep.mubr.bf16.mxu0 %v1726_v7 }
 0x111   : > { %1349 = vmatmul.mubr.bf16.gmra.mrb[8].mxu1 %v1725_v10 }
 0x112   : > { %1356 = vmatprep.mubr.bf16.mxu1 %v1728_v13 }
 0x115   : > { %1260 = vmatmul.mubr.bf16.gmra.mrb[12].mxu0 %v1730_v15 }
 0x116   : > { %1267 = vmatprep.mubr.bf16.mxu0 %v1732_v16 }
 0x119   : > { %1357 = vmatmul.mubr.bf16.gmra.mrb[12].mxu1 %v1731_v17 }
 0x11a   : > { %1364 = vmatprep.mubr.bf16.mxu1 %v1734_v18 }
 0x11d   : > { %1268 = vmatmul.mubr.bf16.gmra.mrb[16].mxu0 %v1736_v19 }
 0x11e   : > { %1275 = vmatprep.mubr.bf16.mxu0 %v1738_v20 }
 0x121   : > { %1365 = vmatmul.mubr.bf16.gmra.mrb[16].mxu1 %v1737_v21 }
 0x122   : > { %1372 = vmatprep.mubr.bf16.mxu1 %v1740_v22 }
 0x125   : > { %1276 = vmatmul.mubr.bf16.gmra.mrb[20].mxu0 %v1742_v23 }
 0x126   : > { %1283 = vmatprep.mubr.bf16.mxu0 %v1744_v24 }
 0x129   : > { %1373 = vmatmul.mubr.bf16.gmra.mrb[20].mxu1 %v1743_v25 }
 0x12a   : > { %1380 = vmatprep.mubr.bf16.mxu1 %v1746_v26 }
 0x12d   : > { %1284 = vmatmul.mubr.bf16.gmra.mrb[24].mxu0 %v1748_v27 }
 0x12e   : > { %1291 = vmatprep.mubr.bf16.mxu0 %v1750_v28 }
 0x131   : > { %1381 = vmatmul.mubr.bf16.gmra.mrb[24].mxu1 %v1749_v29 }
 0x132   : > { %1388 = vmatprep.mubr.bf16.mxu1 %v1752_v30 }
 0x135   : > { %1292 = vmatmul.mubr.bf16.gmra.mrb[28].mxu0 %v1754_v31 }
 0x139   : > { %1389 = vmatmul.mubr.bf16.gmra.mrb[28].mxu1 %v1755_v32 }
 0x1d0   : > { %v1237_v33 = vpop.f32.mrb[0].mxu0 }
 0x1d1   : > { %v1239_v34 = vpop.f32.mrb[1].mxu0 }
 0x1d2   : > { %v1240_v35 = vpop.f32.mrb[2].mxu0 }
 0x1d3   : > { %v1242_v36 = vpop.f32.mrb[3].mxu0 }
 0x1d4   : > { %v1334_v38 = vpop.f32.mrb[0].mxu1 }
 0x1d5   : > { %v1335_v39 = vadd.f32 %v1334_v38, %v1237_v33  ;;  %v1336_v40 = vpop.f32.mrb[1].mxu1 }
 0x1d6   : > { %v1337_v41 = vpop.f32.mrb[2].mxu1 }
 0x1d7   : > { %v1397_v42 = vadd.f32 %v2998_v37, %v1335_v39  ;;  %v1338_v43 = vadd.f32 %v1337_v41, %v1240_v35  ;;  %v1339_v44 = vpop.f32.mrb[3].mxu1 }
 0x1d8   : > { %v1245_v45 = vpop.f32.mrb[4].mxu0 }
 0x1d9   : > { %1413 = vst [vmem:[%s3001_s30] sm:$0xff] %v1397_v42  ;;  %v1398_v46 = vadd.f32 %v2998_v37, %v1338_v43  ;;  %v1247_v47 = vpop.f32.mrb[5].mxu0 }
 0x1da   : > { %v1248_v48 = vpop.f32.mrb[6].mxu0 }
 0x1db   : > { %1414 = vst [vmem:[%s3001_s30 + $0x8] sm:$0xff] %v1398_v46  ;;  %v1250_v49 = vpop.f32.mrb[7].mxu0 }
 0x1dc   : > { %v1342_v50 = vpop.f32.mrb[4].mxu1 }
 0x1dd   : > { %v1343_v51 = vadd.f32 %v1342_v50, %v1245_v45  ;;  %v1344_v52 = vpop.f32.mrb[5].mxu1 }
 0x1de   : > { %v1345_v53 = vpop.f32.mrb[6].mxu1 }
 0x1df   : > { %v1399_v54 = vadd.f32 %v2998_v37, %v1343_v51  ;;  %v1346_v55 = vadd.f32 %v1345_v53, %v1248_v48  ;;  %v1347_v56 = vpop.f32.mrb[7].mxu1 }
 0x1e0   : > { %v1253_v57 = vpop.f32.mrb[8].mxu0 }
 0x1e1   : > { %1415 = vst [vmem:[%s3001_s30 + $0x10] sm:$0xff] %v1399_v54  ;;  %v1400_v8 = vadd.f32 %v2998_v37, %v1346_v55  ;;  %v1255_v58 = vpop.f32.mrb[9].mxu0 }
 0x1e2   : > { %v1256_v59 = vpop.f32.mrb[10].mxu0 }
 0x1e3   : > { %1416 = vst [vmem:[%s3001_s30 + $0x18] sm:$0xff] %v1400_v8  ;;  %v1258_v60 = vpop.f32.mrb[11].mxu0 }
 0x1e4   : > { %v1350_v9 = vpop.f32.mrb[8].mxu1 }
 0x1e5   : > { %v1351_v61 = vadd.f32 %v1350_v9, %v1253_v57  ;;  %v1352_v62 = vpop.f32.mrb[9].mxu1 }
 0x1e6   : > { %v1353_v63 = vpop.f32.mrb[10].mxu1 }
 0x1e7   : > { %v1401_v0 = vadd.f32 %v2998_v37, %v1351_v61  ;;  %v1354_v1 = vadd.f32 %v1353_v63, %v1256_v59  ;;  %v1355_v2 = vpop.f32.mrb[11].mxu1 }
 0x1e8   : > { %v1261_v3 = vpop.f32.mrb[12].mxu0 }
 0x1e9   : > { %1417 = vst [vmem:[%s3001_s30 + $0x20] sm:$0xff] %v1401_v0  ;;  %v1402_v14 = vadd.f32 %v2998_v37, %v1354_v1  ;;  %v1263_v4 = vpop.f32.mrb[13].mxu0 }
 0x1ea   : > { %v1264_v12 = vpop.f32.mrb[14].mxu0 }
 0x1eb   : > { %1418 = vst [vmem:[%s3001_s30 + $0x28] sm:$0xff] %v1402_v14  ;;  %v1266_v5 = vpop.f32.mrb[15].mxu0 }
 0x1ec   : > { %v1358_v11 = vpop.f32.mrb[12].mxu1 }
 0x1ed   : > { %v1359_v6 = vadd.f32 %v1358_v11, %v1261_v3  ;;  %v1360_v7 = vpop.f32.mrb[13].mxu1 }
 0x1ee   : > { %v1361_v10 = vpop.f32.mrb[14].mxu1 }
 0x1ef   : > { %v1403_v13 = vadd.f32 %v2998_v37, %v1359_v6  ;;  %v1362_v15 = vadd.f32 %v1361_v10, %v1264_v12  ;;  %v1363_v16 = vpop.f32.mrb[15].mxu1 }
 0x1f0   : > { %v1269_v17 = vpop.f32.mrb[16].mxu0 }
 0x1f1   : > { %1419 = vst [vmem:[%s3001_s30 + $0x30] sm:$0xff] %v1403_v13  ;;  %v1404_v18 = vadd.f32 %v2998_v37, %v1362_v15  ;;  %v1271_v19 = vpop.f32.mrb[17].mxu0 }
 0x1f2   : > { %v1272_v20 = vpop.f32.mrb[18].mxu0 }
 0x1f3   : > { %1420 = vst [vmem:[%s3001_s30 + $0x38] sm:$0xff] %v1404_v18  ;;  %v1274_v21 = vpop.f32.mrb[19].mxu0 }
 0x1f4   : > { %v1366_v22 = vpop.f32.mrb[16].mxu1 }
 0x1f5   : > { %v1367_v23 = vadd.f32 %v1366_v22, %v1269_v17  ;;  %v1368_v24 = vpop.f32.mrb[17].mxu1 }
 0x1f6   : > { %v1369_v25 = vpop.f32.mrb[18].mxu1 }
 0x1f7   : > { %v1405_v26 = vadd.f32 %v2998_v37, %v1367_v23  ;;  %v1370_v27 = vadd.f32 %v1369_v25, %v1272_v20  ;;  %v1371_v28 = vpop.f32.mrb[19].mxu1 }
 0x1f8   : > { %v1277_v29 = vpop.f32.mrb[20].mxu0 }
 0x1f9   : > { %1421 = vst [vmem:[%s3001_s30 + $0x40] sm:$0xff] %v1405_v26  ;;  %v1406_v30 = vadd.f32 %v2998_v37, %v1370_v27  ;;  %v1279_v31 = vpop.f32.mrb[21].mxu0 }
 0x1fa   : > { %v1280_v32 = vpop.f32.mrb[22].mxu0 }
 0x1fb   : > { %1422 = vst [vmem:[%s3001_s30 + $0x48] sm:$0xff] %v1406_v30  ;;  %v1282_v33 = vpop.f32.mrb[23].mxu0 }
 0x1fc   : > { %v1374_v34 = vpop.f32.mrb[20].mxu1 }
 0x1fd   : > { %v1375_v35 = vadd.f32 %v1374_v34, %v1277_v29  ;;  %v1376_v36 = vpop.f32.mrb[21].mxu1 }
 0x1fe   : > { %v1377_v38 = vpop.f32.mrb[22].mxu1 }
 0x1ff   : > { %v1407_v39 = vadd.f32 %v2998_v37, %v1375_v35  ;;  %v1378_v40 = vadd.f32 %v1377_v38, %v1280_v32  ;;  %v1379_v41 = vpop.f32.mrb[23].mxu1 }
 0x200   : > { %v1285_v42 = vpop.f32.mrb[24].mxu0 }
 0x201   : > { %1423 = vst [vmem:[%s3001_s30 + $0x50] sm:$0xff] %v1407_v39  ;;  %v1408_v43 = vadd.f32 %v2998_v37, %v1378_v40  ;;  %v1287_v44 = vpop.f32.mrb[25].mxu0 }
 0x202   : > { %v1288_v45 = vpop.f32.mrb[26].mxu0 }
 0x203   : > { %1424 = vst [vmem:[%s3001_s30 + $0x58] sm:$0xff] %v1408_v43  ;;  %v1290_v46 = vpop.f32.mrb[27].mxu0 }
 0x204   : > { %v1382_v47 = vpop.f32.mrb[24].mxu1 }
 0x205   : > { %v1383_v48 = vadd.f32 %v1382_v47, %v1285_v42  ;;  %v1384_v49 = vpop.f32.mrb[25].mxu1 }
 0x206   : > { %v1385_v50 = vpop.f32.mrb[26].mxu1 }
 0x207   : > { %v1409_v51 = vadd.f32 %v2998_v37, %v1383_v48  ;;  %v1386_v52 = vadd.f32 %v1385_v50, %v1288_v45  ;;  %v1387_v53 = vpop.f32.mrb[27].mxu1 }
 0x208   : > { %v1293_v54 = vpop.f32.mrb[28].mxu0 }
 0x209   : > { %1425 = vst [vmem:[%s3001_s30 + $0x60] sm:$0xff] %v1409_v51  ;;  %v1410_v55 = vadd.f32 %v2998_v37, %v1386_v52  ;;  %v1295_v56 = vpop.f32.mrb[29].mxu0 }
 0x20a   : > { %v1296_v57 = vpop.f32.mrb[30].mxu0 }
 0x20b   : > { %1426 = vst [vmem:[%s3001_s30 + $0x68] sm:$0xff] %v1410_v55  ;;  %v1298_v8 = vpop.f32.mrb[31].mxu0 }
 0x20c   : > { %v1390_v58 = vpop.f32.mrb[28].mxu1 }
 0x20d   : > { %v1391_v59 = vadd.f32 %v1390_v58, %v1293_v54  ;;  %v1392_v60 = vpop.f32.mrb[29].mxu1 }
 0x20e   : > { %v1393_v9 = vpop.f32.mrb[30].mxu1 }
 0x20f   : > { %v1411_v61 = vadd.f32 %v2998_v37, %v1391_v59  ;;  %v1394_v62 = vadd.f32 %v1393_v9, %v1296_v57  ;;  %v1395_v63 = vpop.f32.mrb[31].mxu1 }
 0x211   : > { %1427 = vst [vmem:[%s3001_s30 + $0x70] sm:$0xff] %v1411_v61  ;;  %v1412_v0 = vadd.f32 %v2998_v37, %v1394_v62 }
 0x213   : > { %1428 = vst [vmem:[%s3001_s30 + $0x78] sm:$0xff] %v1412_v0 }
 0x214   : > { %1840 = shalt.err (!%p1837_p5)
}
 0x215   : > { %s1841_s6 = scalar_lea.hbm %s3036_s24, 2048  ;;  %s1845_s5 = scalar_lea.hbm %s3094_s4, 4096 }
 0x216   : > { %p1842_p3 = scmp.ne.s32.totalorder %s3036_s24, %s1841_s6  ;;  %p1846_p2 = scmp.lt.u32.totalorder %s3036_s24, %s3094_s4 }
 0x217   : > { %p1847_p7 = scmp.lt.u32.totalorder %s1845_s5, %s1841_s6  ;;  %p1849_p4 = scmp.lt.u32.totalorder %s1841_s6, %s3036_s24 }
 0x218   : > { %p1843_p6 = pnand %p1842_p3, %p3241_p11 }
 0x219   : > { %p1848_p13 = por %p1847_p7, %p1846_p2 }
 0x21a   : > { %p1844_p10 = pneg %p1843_p6 }
 0x21b   : > { %p1850_p1 = por %p1849_p4, %p1848_p13 }
 0x21d   : > { %p1851_p0 = pnand %p1850_p1, %p1844_p10 }
 0x21f   : > { %1854 = shalt.err (!%p1851_p0)
}
 0x220   : > { %s1927_s9 = smov 128   ;;  %s1928_s29 = smov 256  }
 0x221   : > { %s1929_s13 = smov 8  }
 0x222   : > { %1628 = dma.vmem_to_hbm [thread:$0]  (%p3241_p11), %s3038_s28, 2048, %s3036_s24, %s1430_s18, %s1927_s9, %s1928_s29, %s1929_s13  }
 0x223 PF: > { %s1457_s14 = sand.u32 1, %s1897_s15   ;;  %p3242_p8 = scmp.ne.s32.totalorder %s3102_s27, 0 }
 0x224   : > { %p3243_p9 = scmp.ge.s32.totalorder %s1917_s20, 2  ;;  %s1458_s22 = scalar_lea.sflag [#allocation4], %s1457_s14 }
 0x226   : > { %p1642_p12 = pnand %p3243_p9, %p3242_p8 }
 0x228   : > { %1892 = dma.done.wait (!%p1642_p12), %s1458_s22, 2048  }
 0x229   : > { %1894 = vsyncadd (!%p1642_p12), %s1458_s22, 4294965248  ;;  %s22_s20 = sadd.s32 1, %s1917_s20   ;;  %s3244_s15 = smov %s1901_s16 }
 0x22a   : > { %p19_p5 = scmp.ge.s32.totalorder %s22_s20, 4   ;;  %s3245_s16 = smov %s1905_s17 }
 0x22b   : > { %s3246_s17 = smov %s2094_s21  ;;  %s3247_s18 = smov %s1913_s19 }
 0x22c   : > { %s3248_s19 = smov %s3250_s7  ;;  %21 = sbr.rel (!%p19_p5) target bundleno = 8 (0x8), region = 99 }
 0x233   :  { %1463 = vsyncpa [#allocation3], 1 }
 0x234   :  { %1465 = vsyncpa [#allocation3 + $0x1], 1 }
 0x235   :  { %1466 = vsyncpa [#allocation8], 1 }
 0x236   :  { %1468 = vsyncpa [#allocation8 + $0x1], 1 }
 0x237   :  { %1469 = vsyncpa [#allocation4], 1 }
 0x238   :  { %1471 = vsyncpa [#allocation4 + $0x1], 1 }
 0x239   :  { %1472 = vsyncpa [#allocation5], 1 }
 0x23a   :  { %1474 = vsyncpa [#allocation5 + $0x1], 1 }

</bundles_post_ra>
